<compile_context>
chip_gen: v6e
topology: v6e:2x2x1
jax: 0.10.0
libtpu: 0.0.40
codegen_flags: <defaults>
</compile_context>

<pallas_src>
import functools

import jax
import jax.numpy as jnp
from jax.experimental import pallas as pl
from jax.experimental.pallas import tpu as pltpu


def _round_up(x, m):
    return (x + m - 1) // m * m


def _vmem_limit_bytes():
    """Generation-aware VMEM limit (v5e/v6e: 128 MiB phys, v7x: 64 MiB)."""
    default = 64 * 1024 * 1024
    try:
        info = pltpu.get_tpu_info()
        phys = int(getattr(info, "vmem_capacity_bytes", default))
    except Exception:
        phys = default
    return int(min(phys * 3 // 4, 100 * 1024 * 1024))


def _pick_tile_h(Ho, Wo, per_row_bytes, budget_bytes):
    """Largest output-row tile that fits the VMEM budget and keeps the MXU M
    dimension (tile_h * Wo) <= ~2048.  Prefers an exact divisor of Ho (no
    remainder tile) when one at least half as large exists; otherwise accepts
    a remainder tile (masked in-kernel) instead of degenerating to tile_h=1."""
    cap = max(1, min(Ho,
                     budget_bytes // max(per_row_bytes, 1),
                     max(1, 2048 // max(Wo, 1))))
    best_div = 1
    for th in range(cap, 0, -1):
        if Ho % th == 0:
            best_div = th
            break
    return best_div if 2 * best_div >= cap else cap


# -----------------------------------------------------------------------------
# Shared conv body: depthwise 3x3 + pointwise 1x1 as 9 accumulated MXU matmuls
# -----------------------------------------------------------------------------
def _accumulate_conv(x_ref, w9_ref, acc_ref, *, stride, tile_h, Wo, Cin, windowed):
    """acc_ref[(tile_h*Wo, Cp)] <- conv of this output-row tile.

    x_ref: either the whole padded image (resident path) or this tile's halo'd
           row window (windowed path).  w9_ref: (9, Cin, Cp) folded weights.
    """
    th = tile_h
    if windowed:
        row0 = 0  # windowed ref already starts at this tile's first halo row
    else:
        row0 = pl.multiple_of(pl.program_id(1) * (th * stride), th * stride)

    def mm(patch, k):
        # (th, Wo, Cin) -> (th*Wo, Cin); free when Wo % 8 == 0 (sublane aligned).
        lhs = patch.reshape(th * Wo, Cin).astype(jnp.float32)
        acc_ref[...] += jnp.dot(lhs, w9_ref[k], preferred_element_type=jnp.float32)

    acc_ref[...] = jnp.zeros_like(acc_ref)
    if stride == 1:
        for kh in range(3):
            for kw in range(3):
                mm(x_ref[pl.ds(row0 + kh, th), pl.ds(kw, Wo), :], kh * 3 + kw)
    elif stride == 2:
        # Two strided phase loads per kernel row (even/odd columns) instead of
        # three strided sublane reads; the per-tap selection is a unit-stride
        # slice of the loaded value.
        for kh in range(3):
            even = x_ref[pl.ds(row0 + kh, th, stride=2),
                         pl.ds(0, Wo + 1, stride=2), :]
            odd = x_ref[pl.ds(row0 + kh, th, stride=2),
                        pl.ds(1, Wo, stride=2), :]
            mm(even[:, 0:Wo, :], kh * 3 + 0)
            mm(odd, kh * 3 + 1)
            mm(even[:, 1:Wo + 1, :], kh * 3 + 2)
    else:
        for kh in range(3):
            for kw in range(3):
                mm(x_ref[pl.ds(row0 + kh, th, stride=stride),
                         pl.ds(kw, Wo, stride=stride), :], kh * 3 + kw)


# -----------------------------------------------------------------------------
# Pass 1: conv -> per-tile BatchNorm partial statistics (sum, M2) only
# -----------------------------------------------------------------------------
def _conv_stats_kernel(x_ref, w9_ref, stats_ref, acc_ref, *,
                       stride, tile_h, Wo, Cin, Ho, windowed):
    _accumulate_conv(x_ref, w9_ref, acc_ref, stride=stride, tile_h=tile_h,
                     Wo=Wo, Cin=Cin, windowed=windowed)
    y = acc_ref[...]                                    # (tile_h*Wo, Cp) f32
    rows = tile_h * Wo

    if Ho % tile_h != 0:
        # Remainder tile: exclude output rows >= Ho from the statistics.
        t = pl.program_id(1)
        valid_rows = jnp.minimum(tile_h, Ho - t * tile_h)
        ridx = jax.lax.broadcasted_iota(jnp.int32, (rows, 1), 0) // Wo
        mask = ridx < valid_rows
        y = jnp.where(mask, y, 0.0)
        inv_cnt = 1.0 / (valid_rows * Wo).astype(jnp.float32)
    else:
        mask = None
        inv_cnt = 1.0 / float(rows)

    tsum = jnp.sum(y, axis=0, keepdims=True)            # (1, Cp)
    dev = y - tsum * inv_cnt                            # y - tile_mean
    if mask is not None:
        dev = jnp.where(mask, dev, 0.0)
    stats_ref[0:1, :] = tsum                             # per-tile sum
    stats_ref[1:2, :] = jnp.sum(dev * dev, axis=0, keepdims=True)  # per-tile M2


# -----------------------------------------------------------------------------
# Pass 2: recompute conv, apply fused BatchNorm (scale/shift) + PReLU
# -----------------------------------------------------------------------------
def _conv_bn_prelu_kernel(x_ref, w9_ref, params_ref, o_ref, acc_ref, *,
                          stride, tile_h, Wo, Cin, Cout, windowed):
    _accumulate_conv(x_ref, w9_ref, acc_ref, stride=stride, tile_h=tile_h,
                     Wo=Wo, Cin=Cin, windowed=windowed)
    y = acc_ref[...]                                     # (tile_h*Wo, Cp) f32
    scale = params_ref[0:1, :]
    shift = params_ref[1:2, :]
    alpha = params_ref[2:3, :]
    z = y * scale + shift
    z = jnp.where(z > 0, z, alpha * z)
    # Store at the real Cout width (masked lanes): avoids writing the 128-padded
    # channels back to HBM.
    o_ref[...] = z[:, :Cout].reshape(tile_h, Wo, Cout).astype(o_ref.dtype)


# -----------------------------------------------------------------------------
# Wrapper (PyTorch-style NCHW in/out)
# -----------------------------------------------------------------------------
def depthwise_separable_conv(x_nchw, dw_w, pw_w, gamma, beta, alpha,
                             *, stride, eps=1e-5):
    """x_nchw: (N, Cin, H, W); dw_w: (Cin, 1, 3, 3); pw_w: (Cout, Cin, 1, 1)."""
    N, Cin, H, W = x_nchw.shape
    Cout = pw_w.shape[0]
    Ho = (H - 1) // stride + 1
    Wo = (W - 1) // stride + 1
    Hp, Wp = H + 2, W + 2
    Cp = _round_up(Cout, 128)                 # lane-dense matmul N dimension

    # ---------------- generation-aware VMEM budget & tiling ------------------
    vmem_limit = _vmem_limit_bytes()
    work_budget = (vmem_limit * 3) // 5
    img_bytes = 2 * Hp * Wp * Cin * 4                       # double-buffered image
    fixed_bytes = 2 * 9 * Cin * Cp * 4 + 16 * Cp * 4        # w9 (x2 bufs) + params
    windowed = img_bytes > work_budget // 4                 # stream halo'd windows
    per_row = 4 * Wo * (2 * Cp + 2 * Cout)                  # acc + temps + out bufs
    if windowed:
        per_row += 2 * 4 * stride * Wp * Cin                # 2x halo'd input rows
        budget = work_budget - fixed_bytes
    else:
        budget = work_budget - fixed_bytes - img_bytes
    tile_h = _pick_tile_h(Ho, Wo, per_row, max(budget, per_row))
    T = pl.cdiv(Ho, tile_h)
    Ho_pad = T * tile_h
    win_rows = (tile_h - 1) * stride + 3                    # halo'd rows per tile
    Hpp = max(Hp, (Ho_pad - 1) * stride + 3)                # incl. remainder pad

    # ---------------- boundary glue (layout + zero halo) ---------------------
    # TODO(synk): keep the surrounding model NHWC end-to-end and fold the 1-px
    # zero halo into the kernel to drop these XLA copies.
    x = jnp.transpose(x_nchw, (0, 2, 3, 1))                                  # NHWC
    xp = jnp.pad(x, ((0, 0), (1, 1 + (Hpp - Hp)), (1, 1), (0, 0)))

    # Fold the depthwise taps into the pointwise weights:
    #   y[p, o] = sum_k patch_k[p, :] @ (dw[k][:, None] * pw)  -> all on the MXU.
    dw = jnp.transpose(dw_w[:, 0], (1, 2, 0)).reshape(9, Cin).astype(jnp.float32)
    pw = jnp.transpose(pw_w[:, :, 0, 0], (1, 0)).astype(jnp.float32)  # (Cin, Cout)
    pw = jnp.pad(pw, ((0, 0), (0, Cp - Cout)))                         # (Cin, Cp)
    w9 = dw[:, :, None] * pw[None, :, :]                               # (9, Cin, Cp)

    cparams = pltpu.CompilerParams(
        dimension_semantics=("parallel", "parallel"),   # megacore sharding
        vmem_limit_bytes=vmem_limit)

    if windowed:
        # Large image: stream overlapping halo'd output-row windows so input
        # VMEM is ~independent of H (v7x 64 MiB friendly).
        x_spec = pl.BlockSpec(
            (None, pl.Element(win_rows), Wp, Cin),
            lambda n, t: (n, t * tile_h * stride, 0, 0))
    else:
        # Small image: keep it VMEM-resident per batch (fetched once per n).
        x_spec = pl.BlockSpec((None, Hpp, Wp, Cin), lambda n, t: (n, 0, 0, 0))
    w9_spec = pl.BlockSpec((9, Cin, Cp), lambda n, t: (0, 0, 0))

    # ---- pass 1: conv -> per-tile BN statistics (no big intermediate) -------
    kern1 = functools.partial(_conv_stats_kernel, stride=stride, tile_h=tile_h,
                              Wo=Wo, Cin=Cin, Ho=Ho, windowed=windowed)
    stats = pl.pallas_call(
        kern1,
        grid=(N, T),
        in_specs=[x_spec, w9_spec],
        out_specs=pl.BlockSpec((None, None, 2, Cp), lambda n, t: (n, t, 0, 0)),
        out_shape=jax.ShapeDtypeStruct((N, T, 2, Cp), jnp.float32),
        scratch_shapes=[pltpu.VMEM((tile_h * Wo, Cp), jnp.float32)],
        compiler_params=cparams,
    )(xp, w9)

    # ---- exact combination of per-tile (sum, M2) -> BN scale/shift -----------
    counts = jnp.array([min(tile_h, Ho - t * tile_h) * Wo for t in range(T)],
                       jnp.float32)                                       # (T,)
    total = jnp.float32(N * Ho * Wo)
    tsum, m2 = stats[:, :, 0, :], stats[:, :, 1, :]                       # (N,T,Cp)
    mean = jnp.sum(tsum, axis=(0, 1)) / total                             # (Cp,)
    tile_mean = tsum / counts[None, :, None]
    var = (jnp.sum(m2, axis=(0, 1))
           + jnp.sum(counts[None, :, None] * (tile_mean - mean) ** 2, axis=(0, 1))
           ) / total                                                      # biased
    inv = jax.lax.rsqrt(var + eps)
    g = jnp.pad(gamma.astype(jnp.float32), (0, Cp - Cout))
    b = jnp.pad(beta.astype(jnp.float32), (0, Cp - Cout))
    a = jnp.pad(alpha.astype(jnp.float32), (0, Cp - Cout))
    params = jnp.stack([g * inv, b - mean * (g * inv), a], axis=0)        # (3, Cp)

    # ---- pass 2: recompute conv + fused BN + PReLU, store at Cout width ------
    kern2 = functools.partial(_conv_bn_prelu_kernel, stride=stride, tile_h=tile_h,
                              Wo=Wo, Cin=Cin, Cout=Cout, windowed=windowed)
    out = pl.pallas_call(
        kern2,
        grid=(N, T),
        in_specs=[x_spec, w9_spec, pl.BlockSpec((3, Cp), lambda n, t: (0, 0))],
        out_specs=pl.BlockSpec((None, tile_h, Wo, Cout), lambda n, t: (n, t, 0, 0)),
        out_shape=jax.ShapeDtypeStruct((N, Ho_pad, Wo, Cout), x_nchw.dtype),
        scratch_shapes=[pltpu.VMEM((tile_h * Wo, Cp), jnp.float32)],
        compiler_params=cparams,
    )(xp, w9, params)

    if Ho_pad != Ho:
        out = out[:, :Ho]
    # TODO(synk): an NHWC consumer could take `out` directly and skip this transpose.
    return jnp.transpose(out, (0, 3, 1, 2))


# -----------------------------------------------------------------------------
# Pure-JAX reference matching the PyTorch forward (training-mode BatchNorm)
# -----------------------------------------------------------------------------
def _reference(x, dw_w, pw_w, gamma, beta, alpha, stride, eps=1e-5):
    hp = jax.lax.Precision.HIGHEST
    y = jax.lax.conv_general_dilated(
        x, dw_w, (stride, stride), ((1, 1), (1, 1)),
        feature_group_count=x.shape[1],
        dimension_numbers=('NCHW', 'OIHW', 'NCHW'), precision=hp)
    y = jax.lax.conv_general_dilated(
        y, pw_w, (1, 1), ((0, 0), (0, 0)),
        dimension_numbers=('NCHW', 'OIHW', 'NCHW'), precision=hp)
    mean = y.mean(axis=(0, 2, 3), keepdims=True)
    var = ((y - mean) ** 2).mean(axis=(0, 2, 3), keepdims=True)
    y = (y - mean) * jax.lax.rsqrt(var + eps) * gamma.reshape(1, -1, 1, 1) \
        + beta.reshape(1, -1, 1, 1)
    a = alpha.reshape(1, -1, 1, 1)
    return jnp.where(y > 0, y, a * y)


if __name__ == "__main__":
    key = jax.random.PRNGKey(0)
    cases = [
        # (N, Cin, H, W, Cout, stride)
        (2, 4, 16, 16, 8, 1),
        (2, 4, 15, 15, 8, 2),     # odd spatial extent, stride-2 tap path
    ]
    for (N, Cin, H, W, Cout, stride) in cases:
        key, k1, k2, k3 = jax.random.split(key, 4)
        x = jax.random.normal(k1, (N, Cin, H, W), dtype=jnp.float32)
        # Deterministic synthetic parameters (shapes from the nn.Module __init__):
        dw_w = 0.1 * jax.random.normal(k2, (Cin, 1, 3, 3), dtype=jnp.float32)
        pw_w = 0.1 * jax.random.normal(k3, (Cout, Cin, 1, 1), dtype=jnp.float32)
        gamma = jnp.ones((Cout,), jnp.float32)          # BatchNorm weight
        beta = jnp.zeros((Cout,), jnp.float32)          # BatchNorm bias
        alpha = 0.25 * jnp.ones((Cout,), jnp.float32)   # PReLU default init

        out = depthwise_separable_conv(x, dw_w, pw_w, gamma, beta, alpha,
                                       stride=stride)
        out = jax.block_until_ready(out)

        ref = _reference(x, dw_w, pw_w, gamma, beta, alpha, stride)
        Ho = (H - 1) // stride + 1
        Wo = (W - 1) // stride + 1
        assert out.shape == ref.shape == (N, Cout, Ho, Wo), (out.shape, ref.shape)
        err = float(jnp.max(jnp.abs(out - ref)))
        assert jnp.allclose(out, ref, atol=1e-3, rtol=1e-3), err

    print("KERNEL_OK")
</pallas_src>

<mosaic_0001>
module attributes {stable_mosaic.version = 11 : i64} {
  func.func @_conv_stats_kernel(%arg0: i32, %arg1: i32, %arg2: memref<1x18x18x4xf32, #tpu.memory_space<vmem>>, %arg3: memref<9x4x128xf32, #tpu.memory_space<vmem>>, %arg4: memref<1x1x2x128xf32, #tpu.memory_space<vmem>>, %arg5: memref<256x128xf32, #tpu.memory_space<vmem>>) attributes {dimension_semantics = [#tpu.dimension_semantics<parallel>, #tpu.dimension_semantics<parallel>], iteration_bounds = array<i64: 2, 1>, scalar_prefetch = 0 : i64, scratch_operands = 1 : i64, tpu.core_type = #tpu.core_type<tc>, window_params = [{transform_indices = @transform_0, window_bounds = array<i64: 1, 18, 18, 4>}, {pipeline_mode = #tpu.pipeline_mode<synchronous>, transform_indices = @transform_1, window_bounds = array<i64: 9, 4, 128>}, {transform_indices = @transform_2, window_bounds = array<i64: 1, 1, 2, 128>}]} {
    %c16_i32 = arith.constant 16 : i32
    %0 = arith.muli %arg1, %c16_i32 : i32
    %1 = tpu.assume_multiple %0, 16 : i32
    %cst = arith.constant 0.000000e+00 : f32
    %2 = vector.broadcast %cst : f32 to vector<256x128xf32>
    %c0 = arith.constant 0 : index
    %c0_0 = arith.constant 0 : index
    %3 = vector.load %arg5[%c0, %c0_0] : memref<256x128xf32, #tpu.memory_space<vmem>>, vector<256x128xf32>
    tpu.vector_store %arg5[%c0, %c0_0], %2 {strides = array<i32>} : memref<256x128xf32, #tpu.memory_space<vmem>>, vector<256x128xf32>,
    %c0_i32 = arith.constant 0 : i32
    %4 = arith.addi %1, %c0_i32 : i32
    %c0_1 = arith.constant 0 : index
    %5 = arith.index_cast %4 : i32 to index
    %c0_2 = arith.constant 0 : index
    %c0_3 = arith.constant 0 : index
    %6 = vector.load %arg2[%c0_1, %5, %c0_2, %c0_3] : memref<1x18x18x4xf32, #tpu.memory_space<vmem>>, vector<1x16x16x4xf32>
    %7 = vector.shape_cast %6 : vector<1x16x16x4xf32> to vector<16x16x4xf32>
    %8 = vector.shape_cast %7 : vector<16x16x4xf32> to vector<256x4xf32>
    %c0_4 = arith.constant 0 : index
    %c0_5 = arith.constant 0 : index
    %9 = vector.load %arg5[%c0_4, %c0_5] : memref<256x128xf32, #tpu.memory_space<vmem>>, vector<256x128xf32>
    %c0_6 = arith.constant 0 : index
    %c0_7 = arith.constant 0 : index
    %c0_8 = arith.constant 0 : index
    %10 = vector.load %arg3[%c0_6, %c0_7, %c0_8] : memref<9x4x128xf32, #tpu.memory_space<vmem>>, vector<1x4x128xf32>
    %11 = vector.shape_cast %10 : vector<1x4x128xf32> to vector<4x128xf32>
    %cst_9 = arith.constant dense<0.000000e+00> : vector<256x128xf32>
    %12 = tpu.matmul %8, %11, %cst_9 {dimension_numbers = #tpu.dot_dimension_numbers<[1], [0], [0], [1], [0, 0, 1, 1], [], []>} : vector<256x4xf32>, vector<4x128xf32>, vector<256x128xf32> -> vector<256x128xf32>
    %13 = arith.addf %9, %12 : vector<256x128xf32>
    %c0_10 = arith.constant 0 : index
    %c0_11 = arith.constant 0 : index
    %14 = vector.load %arg5[%c0_10, %c0_11] : memref<256x128xf32, #tpu.memory_space<vmem>>, vector<256x128xf32>
    tpu.vector_store %arg5[%c0_10, %c0_11], %13 {strides = array<i32>} : memref<256x128xf32, #tpu.memory_space<vmem>>, vector<256x128xf32>,
    %c0_i32_12 = arith.constant 0 : i32
    %15 = arith.addi %1, %c0_i32_12 : i32
    %c0_13 = arith.constant 0 : index
    %16 = arith.index_cast %15 : i32 to index
    %c1 = arith.constant 1 : index
    %c0_14 = arith.constant 0 : index
    %17 = vector.load %arg2[%c0_13, %16, %c1, %c0_14] : memref<1x18x18x4xf32, #tpu.memory_space<vmem>>, vector<1x16x16x4xf32>
    %18 = vector.shape_cast %17 : vector<1x16x16x4xf32> to vector<16x16x4xf32>
    %19 = vector.shape_cast %18 : vector<16x16x4xf32> to vector<256x4xf32>
    %c0_15 = arith.constant 0 : index
    %c0_16 = arith.constant 0 : index
    %20 = vector.load %arg5[%c0_15, %c0_16] : memref<256x128xf32, #tpu.memory_space<vmem>>, vector<256x128xf32>
    %c1_17 = arith.constant 1 : index
    %c0_18 = arith.constant 0 : index
    %c0_19 = arith.constant 0 : index
    %21 = vector.load %arg3[%c1_17, %c0_18, %c0_19] : memref<9x4x128xf32, #tpu.memory_space<vmem>>, vector<1x4x128xf32>
    %22 = vector.shape_cast %21 : vector<1x4x128xf32> to vector<4x128xf32>
    %cst_20 = arith.constant dense<0.000000e+00> : vector<256x128xf32>
    %23 = tpu.matmul %19, %22, %cst_20 {dimension_numbers = #tpu.dot_dimension_numbers<[1], [0], [0], [1], [0, 0, 1, 1], [], []>} : vector<256x4xf32>, vector<4x128xf32>, vector<256x128xf32> -> vector<256x128xf32>
    %24 = arith.addf %20, %23 : vector<256x128xf32>
    %c0_21 = arith.constant 0 : index
    %c0_22 = arith.constant 0 : index
    %25 = vector.load %arg5[%c0_21, %c0_22] : memref<256x128xf32, #tpu.memory_space<vmem>>, vector<256x128xf32>
    tpu.vector_store %arg5[%c0_21, %c0_22], %24 {strides = array<i32>} : memref<256x128xf32, #tpu.memory_space<vmem>>, vector<256x128xf32>,
    %c0_i32_23 = arith.constant 0 : i32
    %26 = arith.addi %1, %c0_i32_23 : i32
    %c0_24 = arith.constant 0 : index
    %27 = arith.index_cast %26 : i32 to index
    %c2 = arith.constant 2 : index
    %c0_25 = arith.constant 0 : index
    %28 = vector.load %arg2[%c0_24, %27, %c2, %c0_25] : memref<1x18x18x4xf32, #tpu.memory_space<vmem>>, vector<1x16x16x4xf32>
    %29 = vector.shape_cast %28 : vector<1x16x16x4xf32> to vector<16x16x4xf32>
    %30 = vector.shape_cast %29 : vector<16x16x4xf32> to vector<256x4xf32>
    %c0_26 = arith.constant 0 : index
    %c0_27 = arith.constant 0 : index
    %31 = vector.load %arg5[%c0_26, %c0_27] : memref<256x128xf32, #tpu.memory_space<vmem>>, vector<256x128xf32>
    %c2_28 = arith.constant 2 : index
    %c0_29 = arith.constant 0 : index
    %c0_30 = arith.constant 0 : index
    %32 = vector.load %arg3[%c2_28, %c0_29, %c0_30] : memref<9x4x128xf32, #tpu.memory_space<vmem>>, vector<1x4x128xf32>
    %33 = vector.shape_cast %32 : vector<1x4x128xf32> to vector<4x128xf32>
    %cst_31 = arith.constant dense<0.000000e+00> : vector<256x128xf32>
    %34 = tpu.matmul %30, %33, %cst_31 {dimension_numbers = #tpu.dot_dimension_numbers<[1], [0], [0], [1], [0, 0, 1, 1], [], []>} : vector<256x4xf32>, vector<4x128xf32>, vector<256x128xf32> -> vector<256x128xf32>
    %35 = arith.addf %31, %34 : vector<256x128xf32>
    %c0_32 = arith.constant 0 : index
    %c0_33 = arith.constant 0 : index
    %36 = vector.load %arg5[%c0_32, %c0_33] : memref<256x128xf32, #tpu.memory_space<vmem>>, vector<256x128xf32>
    tpu.vector_store %arg5[%c0_32, %c0_33], %35 {strides = array<i32>} : memref<256x128xf32, #tpu.memory_space<vmem>>, vector<256x128xf32>,
    %c1_i32 = arith.constant 1 : i32
    %37 = arith.addi %1, %c1_i32 : i32
    %c0_34 = arith.constant 0 : index
    %38 = arith.index_cast %37 : i32 to index
    %c0_35 = arith.constant 0 : index
    %c0_36 = arith.constant 0 : index
    %39 = vector.load %arg2[%c0_34, %38, %c0_35, %c0_36] : memref<1x18x18x4xf32, #tpu.memory_space<vmem>>, vector<1x16x16x4xf32>
    %40 = vector.shape_cast %39 : vector<1x16x16x4xf32> to vector<16x16x4xf32>
    %41 = vector.shape_cast %40 : vector<16x16x4xf32> to vector<256x4xf32>
    %c0_37 = arith.constant 0 : index
    %c0_38 = arith.constant 0 : index
    %42 = vector.load %arg5[%c0_37, %c0_38] : memref<256x128xf32, #tpu.memory_space<vmem>>, vector<256x128xf32>
    %c3 = arith.constant 3 : index
    %c0_39 = arith.constant 0 : index
    %c0_40 = arith.constant 0 : index
    %43 = vector.load %arg3[%c3, %c0_39, %c0_40] : memref<9x4x128xf32, #tpu.memory_space<vmem>>, vector<1x4x128xf32>
    %44 = vector.shape_cast %43 : vector<1x4x128xf32> to vector<4x128xf32>
    %cst_41 = arith.constant dense<0.000000e+00> : vector<256x128xf32>
    %45 = tpu.matmul %41, %44, %cst_41 {dimension_numbers = #tpu.dot_dimension_numbers<[1], [0], [0], [1], [0, 0, 1, 1], [], []>} : vector<256x4xf32>, vector<4x128xf32>, vector<256x128xf32> -> vector<256x128xf32>
    %46 = arith.addf %42, %45 : vector<256x128xf32>
    %c0_42 = arith.constant 0 : index
    %c0_43 = arith.constant 0 : index
    %47 = vector.load %arg5[%c0_42, %c0_43] : memref<256x128xf32, #tpu.memory_space<vmem>>, vector<256x128xf32>
    tpu.vector_store %arg5[%c0_42, %c0_43], %46 {strides = array<i32>} : memref<256x128xf32, #tpu.memory_space<vmem>>, vector<256x128xf32>,
    %c1_i32_44 = arith.constant 1 : i32
    %48 = arith.addi %1, %c1_i32_44 : i32
    %c0_45 = arith.constant 0 : index
    %49 = arith.index_cast %48 : i32 to index
    %c1_46 = arith.constant 1 : index
    %c0_47 = arith.constant 0 : index
    %50 = vector.load %arg2[%c0_45, %49, %c1_46, %c0_47] : memref<1x18x18x4xf32, #tpu.memory_space<vmem>>, vector<1x16x16x4xf32>
    %51 = vector.shape_cast %50 : vector<1x16x16x4xf32> to vector<16x16x4xf32>
    %52 = vector.shape_cast %51 : vector<16x16x4xf32> to vector<256x4xf32>
    %c0_48 = arith.constant 0 : index
    %c0_49 = arith.constant 0 : index
    %53 = vector.load %arg5[%c0_48, %c0_49] : memref<256x128xf32, #tpu.memory_space<vmem>>, vector<256x128xf32>
    %c4 = arith.constant 4 : index
    %c0_50 = arith.constant 0 : index
    %c0_51 = arith.constant 0 : index
    %54 = vector.load %arg3[%c4, %c0_50, %c0_51] : memref<9x4x128xf32, #tpu.memory_space<vmem>>, vector<1x4x128xf32>
    %55 = vector.shape_cast %54 : vector<1x4x128xf32> to vector<4x128xf32>
    %cst_52 = arith.constant dense<0.000000e+00> : vector<256x128xf32>
    %56 = tpu.matmul %52, %55, %cst_52 {dimension_numbers = #tpu.dot_dimension_numbers<[1], [0], [0], [1], [0, 0, 1, 1], [], []>} : vector<256x4xf32>, vector<4x128xf32>, vector<256x128xf32> -> vector<256x128xf32>
    %57 = arith.addf %53, %56 : vector<256x128xf32>
    %c0_53 = arith.constant 0 : index
    %c0_54 = arith.constant 0 : index
    %58 = vector.load %arg5[%c0_53, %c0_54] : memref<256x128xf32, #tpu.memory_space<vmem>>, vector<256x128xf32>
    tpu.vector_store %arg5[%c0_53, %c0_54], %57 {strides = array<i32>} : memref<256x128xf32, #tpu.memory_space<vmem>>, vector<256x128xf32>,
    %c1_i32_55 = arith.constant 1 : i32
    %59 = arith.addi %1, %c1_i32_55 : i32
    %c0_56 = arith.constant 0 : index
    %60 = arith.index_cast %59 : i32 to index
    %c2_57 = arith.constant 2 : index
    %c0_58 = arith.constant 0 : index
    %61 = vector.load %arg2[%c0_56, %60, %c2_57, %c0_58] : memref<1x18x18x4xf32, #tpu.memory_space<vmem>>, vector<1x16x16x4xf32>
    %62 = vector.shape_cast %61 : vector<1x16x16x4xf32> to vector<16x16x4xf32>
    %63 = vector.shape_cast %62 : vector<16x16x4xf32> to vector<256x4xf32>
    %c0_59 = arith.constant 0 : index
    %c0_60 = arith.constant 0 : index
    %64 = vector.load %arg5[%c0_59, %c0_60] : memref<256x128xf32, #tpu.memory_space<vmem>>, vector<256x128xf32>
    %c5 = arith.constant 5 : index
    %c0_61 = arith.constant 0 : index
    %c0_62 = arith.constant 0 : index
    %65 = vector.load %arg3[%c5, %c0_61, %c0_62] : memref<9x4x128xf32, #tpu.memory_space<vmem>>, vector<1x4x128xf32>
    %66 = vector.shape_cast %65 : vector<1x4x128xf32> to vector<4x128xf32>
    %cst_63 = arith.constant dense<0.000000e+00> : vector<256x128xf32>
    %67 = tpu.matmul %63, %66, %cst_63 {dimension_numbers = #tpu.dot_dimension_numbers<[1], [0], [0], [1], [0, 0, 1, 1], [], []>} : vector<256x4xf32>, vector<4x128xf32>, vector<256x128xf32> -> vector<256x128xf32>
    %68 = arith.addf %64, %67 : vector<256x128xf32>
    %c0_64 = arith.constant 0 : index
    %c0_65 = arith.constant 0 : index
    %69 = vector.load %arg5[%c0_64, %c0_65] : memref<256x128xf32, #tpu.memory_space<vmem>>, vector<256x128xf32>
    tpu.vector_store %arg5[%c0_64, %c0_65], %68 {strides = array<i32>} : memref<256x128xf32, #tpu.memory_space<vmem>>, vector<256x128xf32>,
    %c2_i32 = arith.constant 2 : i32
    %70 = arith.addi %1, %c2_i32 : i32
    %c0_66 = arith.constant 0 : index
    %71 = arith.index_cast %70 : i32 to index
    %c0_67 = arith.constant 0 : index
    %c0_68 = arith.constant 0 : index
    %72 = vector.load %arg2[%c0_66, %71, %c0_67, %c0_68] : memref<1x18x18x4xf32, #tpu.memory_space<vmem>>, vector<1x16x16x4xf32>
    %73 = vector.shape_cast %72 : vector<1x16x16x4xf32> to vector<16x16x4xf32>
    %74 = vector.shape_cast %73 : vector<16x16x4xf32> to vector<256x4xf32>
    %c0_69 = arith.constant 0 : index
    %c0_70 = arith.constant 0 : index
    %75 = vector.load %arg5[%c0_69, %c0_70] : memref<256x128xf32, #tpu.memory_space<vmem>>, vector<256x128xf32>
    %c6 = arith.constant 6 : index
    %c0_71 = arith.constant 0 : index
    %c0_72 = arith.constant 0 : index
    %76 = vector.load %arg3[%c6, %c0_71, %c0_72] : memref<9x4x128xf32, #tpu.memory_space<vmem>>, vector<1x4x128xf32>
    %77 = vector.shape_cast %76 : vector<1x4x128xf32> to vector<4x128xf32>
    %cst_73 = arith.constant dense<0.000000e+00> : vector<256x128xf32>
    %78 = tpu.matmul %74, %77, %cst_73 {dimension_numbers = #tpu.dot_dimension_numbers<[1], [0], [0], [1], [0, 0, 1, 1], [], []>} : vector<256x4xf32>, vector<4x128xf32>, vector<256x128xf32> -> vector<256x128xf32>
    %79 = arith.addf %75, %78 : vector<256x128xf32>
    %c0_74 = arith.constant 0 : index
    %c0_75 = arith.constant 0 : index
    %80 = vector.load %arg5[%c0_74, %c0_75] : memref<256x128xf32, #tpu.memory_space<vmem>>, vector<256x128xf32>
    tpu.vector_store %arg5[%c0_74, %c0_75], %79 {strides = array<i32>} : memref<256x128xf32, #tpu.memory_space<vmem>>, vector<256x128xf32>,
    %c2_i32_76 = arith.constant 2 : i32
    %81 = arith.addi %1, %c2_i32_76 : i32
    %c0_77 = arith.constant 0 : index
    %82 = arith.index_cast %81 : i32 to index
    %c1_78 = arith.constant 1 : index
    %c0_79 = arith.constant 0 : index
    %83 = vector.load %arg2[%c0_77, %82, %c1_78, %c0_79] : memref<1x18x18x4xf32, #tpu.memory_space<vmem>>, vector<1x16x16x4xf32>
    %84 = vector.shape_cast %83 : vector<1x16x16x4xf32> to vector<16x16x4xf32>
    %85 = vector.shape_cast %84 : vector<16x16x4xf32> to vector<256x4xf32>
    %c0_80 = arith.constant 0 : index
    %c0_81 = arith.constant 0 : index
    %86 = vector.load %arg5[%c0_80, %c0_81] : memref<256x128xf32, #tpu.memory_space<vmem>>, vector<256x128xf32>
    %c7 = arith.constant 7 : index
    %c0_82 = arith.constant 0 : index
    %c0_83 = arith.constant 0 : index
    %87 = vector.load %arg3[%c7, %c0_82, %c0_83] : memref<9x4x128xf32, #tpu.memory_space<vmem>>, vector<1x4x128xf32>
    %88 = vector.shape_cast %87 : vector<1x4x128xf32> to vector<4x128xf32>
    %cst_84 = arith.constant dense<0.000000e+00> : vector<256x128xf32>
    %89 = tpu.matmul %85, %88, %cst_84 {dimension_numbers = #tpu.dot_dimension_numbers<[1], [0], [0], [1], [0, 0, 1, 1], [], []>} : vector<256x4xf32>, vector<4x128xf32>, vector<256x128xf32> -> vector<256x128xf32>
    %90 = arith.addf %86, %89 : vector<256x128xf32>
    %c0_85 = arith.constant 0 : index
    %c0_86 = arith.constant 0 : index
    %91 = vector.load %arg5[%c0_85, %c0_86] : memref<256x128xf32, #tpu.memory_space<vmem>>, vector<256x128xf32>
    tpu.vector_store %arg5[%c0_85, %c0_86], %90 {strides = array<i32>} : memref<256x128xf32, #tpu.memory_space<vmem>>, vector<256x128xf32>,
    %c2_i32_87 = arith.constant 2 : i32
    %92 = arith.addi %1, %c2_i32_87 : i32
    %c0_88 = arith.constant 0 : index
    %93 = arith.index_cast %92 : i32 to index
    %c2_89 = arith.constant 2 : index
    %c0_90 = arith.constant 0 : index
    %94 = vector.load %arg2[%c0_88, %93, %c2_89, %c0_90] : memref<1x18x18x4xf32, #tpu.memory_space<vmem>>, vector<1x16x16x4xf32>
    %95 = vector.shape_cast %94 : vector<1x16x16x4xf32> to vector<16x16x4xf32>
    %96 = vector.shape_cast %95 : vector<16x16x4xf32> to vector<256x4xf32>
    %c0_91 = arith.constant 0 : index
    %c0_92 = arith.constant 0 : index
    %97 = vector.load %arg5[%c0_91, %c0_92] : memref<256x128xf32, #tpu.memory_space<vmem>>, vector<256x128xf32>
    %c8 = arith.constant 8 : index
    %c0_93 = arith.constant 0 : index
    %c0_94 = arith.constant 0 : index
    %98 = vector.load %arg3[%c8, %c0_93, %c0_94] : memref<9x4x128xf32, #tpu.memory_space<vmem>>, vector<1x4x128xf32>
    %99 = vector.shape_cast %98 : vector<1x4x128xf32> to vector<4x128xf32>
    %cst_95 = arith.constant dense<0.000000e+00> : vector<256x128xf32>
    %100 = tpu.matmul %96, %99, %cst_95 {dimension_numbers = #tpu.dot_dimension_numbers<[1], [0], [0], [1], [0, 0, 1, 1], [], []>} : vector<256x4xf32>, vector<4x128xf32>, vector<256x128xf32> -> vector<256x128xf32>
    %101 = arith.addf %97, %100 : vector<256x128xf32>
    %c0_96 = arith.constant 0 : index
    %c0_97 = arith.constant 0 : index
    %102 = vector.load %arg5[%c0_96, %c0_97] : memref<256x128xf32, #tpu.memory_space<vmem>>, vector<256x128xf32>
    tpu.vector_store %arg5[%c0_96, %c0_97], %101 {strides = array<i32>} : memref<256x128xf32, #tpu.memory_space<vmem>>, vector<256x128xf32>,
    %c0_98 = arith.constant 0 : index
    %c0_99 = arith.constant 0 : index
    %103 = vector.load %arg5[%c0_98, %c0_99] : memref<256x128xf32, #tpu.memory_space<vmem>>, vector<256x128xf32>
    %cst_100 = arith.constant dense<0.000000e+00> : vector<128xf32>
    %104 = vector.multi_reduction <add>, %103, %cst_100 [0] : vector<256x128xf32> to vector<128xf32>
    %105 = vector.shape_cast %104 : vector<128xf32> to vector<1x128xf32>
    %cst_101 = arith.constant 3.906250e-03 : f32
    %106 = vector.broadcast %cst_101 : f32 to vector<1x128xf32>
    %107 = arith.mulf %105, %106 : vector<1x128xf32>
    %108 = vector.broadcast %107 : vector<1x128xf32> to vector<256x128xf32>
    %109 = arith.subf %103, %108 : vector<256x128xf32>
    %c0_102 = arith.constant 0 : index
    %c0_103 = arith.constant 0 : index
    %c0_104 = arith.constant 0 : index
    %c0_105 = arith.constant 0 : index
    %110 = vector.load %arg4[%c0_102, %c0_103, %c0_104, %c0_105] : memref<1x1x2x128xf32, #tpu.memory_space<vmem>>, vector<1x1x1x128xf32>
    %111 = vector.shape_cast %110 : vector<1x1x1x128xf32> to vector<1x128xf32>
    %112 = vector.shape_cast %105 : vector<1x128xf32> to vector<1x1x1x128xf32>
    tpu.vector_store %arg4[%c0_102, %c0_103, %c0_104, %c0_105], %112 {strides = array<i32>} : memref<1x1x2x128xf32, #tpu.memory_space<vmem>>, vector<1x1x1x128xf32>,
    %113 = arith.mulf %109, %109 : vector<256x128xf32>
    %cst_106 = arith.constant dense<0.000000e+00> : vector<128xf32>
    %114 = vector.multi_reduction <add>, %113, %cst_106 [0] : vector<256x128xf32> to vector<128xf32>
    %115 = vector.shape_cast %114 : vector<128xf32> to vector<1x128xf32>
    %c0_107 = arith.constant 0 : index
    %c0_108 = arith.constant 0 : index
    %c1_109 = arith.constant 1 : index
    %c0_110 = arith.constant 0 : index
    %116 = vector.load %arg4[%c0_107, %c0_108, %c1_109, %c0_110] : memref<1x1x2x128xf32, #tpu.memory_space<vmem>>, vector<1x1x1x128xf32>
    %117 = vector.shape_cast %116 : vector<1x1x1x128xf32> to vector<1x128xf32>
    %118 = vector.shape_cast %115 : vector<1x128xf32> to vector<1x1x1x128xf32>
    tpu.vector_store %arg4[%c0_107, %c0_108, %c1_109, %c0_110], %118 {strides = array<i32>} : memref<1x1x2x128xf32, #tpu.memory_space<vmem>>, vector<1x1x1x128xf32>,
    return
  }
  func.func @transform_0(%arg0: i32, %arg1: i32) -> (i32, i32, i32, i32) {
    %c0_i32 = arith.constant 0 : i32
    %c0_i32_0 = arith.constant 0 : i32
    %c0_i32_1 = arith.constant 0 : i32
    %c0_i32_2 = arith.constant 0 : i32
    return %arg0, %c0_i32, %c0_i32_0, %c0_i32_1 : i32, i32, i32, i32
  }
  func.func @transform_1(%arg0: i32, %arg1: i32) -> (i32, i32, i32) {
    %c0_i32 = arith.constant 0 : i32
    %c0_i32_0 = arith.constant 0 : i32
    %c0_i32_1 = arith.constant 0 : i32
    %c0_i32_2 = arith.constant 0 : i32
    return %c0_i32, %c0_i32_0, %c0_i32_1 : i32, i32, i32
  }
  func.func @transform_2(%arg0: i32, %arg1: i32) -> (i32, i32, i32, i32) {
    %c0_i32 = arith.constant 0 : i32
    %c0_i32_0 = arith.constant 0 : i32
    %c0_i32_1 = arith.constant 0 : i32
    return %arg0, %arg1, %c0_i32, %c0_i32_0 : i32, i32, i32, i32
  }
}

</mosaic_0001>

<bundles_post_ra>
// kernel: tpu_custom_call.1
= control target key start
LH: loop header
LB: loop body
LE: loop exit
PB: predicated region body
PF: predicated region fallthrough
CT: control target
= control target key end

     0   :  { %7 = vsyncpa [#allocation4], 0  ;;  %s7562_s0 = inlined_call_operand.vmem [shape: f32[2,18,18,4], index: 0, kind: input, shape index: {}]   ;;  %s7563_s1 = inlined_call_operand.vmem [shape: f32[9,4,128], index: 1, kind: input, shape index: {}]   ;;  %s7564_s2 = inlined_call_operand.hbm [shape: f32[2,1,2,128], index: 2, kind: output, shape index: {}]  }
   0x1   :  { %9 = vsyncpa [#allocation4 + $0x1], 0  ;;  %s5957_s9 = smov 0   ;;  %s5959_s10 = smov 0  }
   0x2   :  { %s5961_s11 = smov 0   ;;  %s5963_s12 = smov 0  }
   0x3   :  { %s5965_s13 = smov 0   ;;  %s5967_s14 = smov 0  }
   0x4 LB: > { %s4550_s15 = sadd.s32 4294967295, %s5939_s14   ;;  %s4551_s16 = sadd.s32 4294967294, %s5939_s14   ;;  %s5939_s14 = sphi %s5967_s14, %s15_s14   ;;  %s5935_s13 = sphi %s5965_s13, %s7784_s13   ;;  %s5931_s12 = sphi %s5963_s12, %s7783_s12   ;;  %s5927_s11 = sphi %s5961_s11, %s7782_s11   ;;  %s5923_s10 = sphi %s5959_s10, %s7781_s10   ;;  %s5919_s9 = sphi %s5957_s9, %s7780_s9  }
   0x5   : > { %s27_s17 = sadd.s32 1, %s5935_s13  ;;  %s83_s18 = sadd.s32 1, %s5927_s11 }
   0x6   : > { %p29_p0 = scmp.ge.s32.totalorder %s27_s17, 2  ;;  %p93_p1 = scmp.ne.s32.totalorder %s5927_s11, %s5923_s10 }
   0x7   : > { %p94_p2 = scmp.eq.s32.totalorder %s4550_s15, 1  ;;  %p99_p3 = scmp.ne.s32.totalorder %s5923_s10, %s5919_s9 }
   0x8   : > { %s7786_s17 = smov (%p29_p0, %s27_s17), 0  ;;  %p100_p5 = scmp.eq.s32.totalorder %s4551_s16, 1 }
   0x9   : > { %p5997_p4 = por %p94_p2, %p93_p1  ;;  %s78_s20 = ssub.s32 %s5935_s13, %s7786_s17 }
   0xa   : > { %p4554_p6 = scmp.ge.s32.totalorder %s5939_s14, 1  ;;  %p81_p7 = scmp.eq.s32.totalorder %s78_s20, 0 }
   0xb   : > { %p6004_p8 = por %p100_p5, %p99_p3  ;;  %p129_p9 = scmp.lt.s32.totalorder %s5939_s14, 3 }
   0xc   : > { %s6010_s22 = scalar_select %p81_p7, %s5927_s11, %s83_s18  }
   0xd   : > { %p130_p10 = pnand %p4554_p6, %p129_p9 }
   0xf   : > { %133 = sbr.rel (%p130_p10) target bundleno = 628 (0x274), region = 28 }
  0x14   : > { %v255_v0 = vld [vmem:[%s7563_s1] sm:$0xf]  ;;  %vm353_vm0 = vcmask 1043456   ;;  %p151_p11 = scmp.lt.s32.totalorder %s5931_s12, 1  ;;  %v4590_v1 = vld [vmem:[%s7563_s1 + $0x4] sm:$0xf] }
  0x15   : > { %5805 = vmatprep.subr.msk.mxu1 %vm353_vm0, %v255_v0  ;;  %5355 = vmatprep.subr.msk.mxu0 %vm353_vm0, %v255_v0  ;;  %v4624_v2 = vld [vmem:[%s7563_s1 + $0x8] sm:$0xf]  ;;  %vm256_vm1 = vcmask 31744   ;;  %v6057_v9 = vld [vmem:[%s7563_s1 + $0xc] sm:$0xf]  ;;  %s148_s28 = sand.u32 1, %s5923_s10  }
  0x16   : > { %5806 = vmatpush3.msk.msra.mxu1 %vm353_vm0, %v255_v0  ;;  %5356 = vmatpush3.msk.msra.mxu0 %vm353_vm0, %v255_v0  ;;  %s152_s29 = scalar_select %p151_p11, %s5931_s12, 1  ;;  %v6062_v10 = vld [vmem:[%s7563_s1 + $0x10] sm:$0xf]  ;;  %v6221_v43 = vld [vmem:[%s7563_s1 + $0x14] sm:$0xf] }
  0x17   : > { %5405 = vmatprep.subr.msk.mxu1 %vm353_vm0, %v4590_v1  ;;  %5455 = vmatprep.subr.msk.mxu0 %vm353_vm0, %v4624_v2  ;;  %v6226_v44 = vld [vmem:[%s7563_s1 + $0x18] sm:$0xf]  ;;  %s5055_s3 = sshll.u32 %s5931_s12, 5  ;;  %s4458_s8 = scalar_lea.sflag [#allocation4], %s148_s28 }
  0x18   : > { %s5807_s30 = smul.u32 432, %s152_s29  ;;  %s4555_s29 = sshll.u32 %s148_s28, 1 }
  0x19   : > { %s4470_s7 = scalar_lea.hbm %s7564_s2, %s5055_s3  ;;  %s5941_s16 = smov [#allocation3]  }
  0x1a   : > { %s6032_s5 = scalar_lea.vmem %s7562_s0, %s5807_s30  ;;  %s7464_s30 = scalar_lea.vmem [#allocation3], %s4555_s29 }
  0x1b   : > { %v191_v3 = vld [vmem:[%s6032_s5] sm:$0xff]  ;;  %v192_v5 = vld [vmem:[%s6032_s5 + $0x8] sm:$0xff]  ;;  %v6046_v7 = vld [vmem:[%s6032_s5 + $0x18] sm:$0xff]  ;;  %s4472_s4 = sshll.u32 %s7464_s30, 4  ;;  %s5867_s18 = sshll.u32 %s5941_s16, 4  ;;  %s4473_s4 = int_to_ptr.vmem [resolvable:$true] %s4472_s4  ;;  %s5868_s18 = int_to_ptr.vmem [resolvable:$false] %s5867_s18 }
  0x1c   : > { %v6036_v4 = vld [vmem:[%s6032_s5 + $0xc0] sm:$0xff]  ;;  %5357 = vmatprep.mubr.msk.f32.mxu0 %vm256_vm1, %v191_v3  ;;  %v6043_v6 = vld [vmem:[%s6032_s5 + $0xc8] sm:$0xff]  ;;  %v6049_v8 = vld [vmem:[%s6032_s5 + $0xd8] sm:$0xff]  ;;  %s5863_s15 = scalar_lea.vmem %s4473_s4, 32  ;;  %s5869_s12 = scalar_lea.vmem %s5868_s18, 64 }
  0x1d   : > { %5381 = vmatprep.mubr.msk.f32.mxu1 %vm256_vm1, %v6036_v4  ;;  %5358 = vmatmul.mubr.msk.f32.vlgmr.msra.gmra.mxu0 %vm256_vm1, %v192_v5  ;;  %v6067_v11 = vld [vmem:[%s6032_s5 + $0x20] sm:$0xff]  ;;  %v6077_v13 = vld [vmem:[%s6032_s5 + $0x30] sm:$0xff]  ;;  %v6095_v15 = vld [vmem:[%s6032_s5 + $0x38] sm:$0xff]  ;;  %p5864_p12 = scmp.ne.s32.totalorder %s4473_s4, %s5863_s15  ;;  %p5870_p1 = scmp.lt.s32.totalorder %s4473_s4, %s5868_s18 }
  0x1e   : > { %5382 = vmatmul.mubr.msk.f32.vlgmr.msra.gmra.mxu1 %vm256_vm1, %v6043_v6  ;;  %5456 = vmatpush3.msk.msra.mxu0 %vm353_vm0, %v4624_v2  ;;  %v6070_v12 = vld [vmem:[%s6032_s5 + $0xe0] sm:$0xff]  ;;  %v6080_v14 = vld [vmem:[%s6032_s5 + $0xf0] sm:$0xff]  ;;  %v6098_v16 = vld [vmem:[%s6032_s5 + $0xf8] sm:$0xff]  ;;  %p5871_p2 = scmp.lt.s32.totalorder %s5869_s12, %s5863_s15 }
  0x1f   : > { %5406 = vmatpush3.msk.msra.mxu1 %vm353_vm0, %v4590_v1  ;;  %5360 = vmatprep.mubr.msk.f32.mxu0 %vm256_vm1, %v6046_v7  ;;  %v6101_v17 = vld [vmem:[%s6032_s5 + $0x48] sm:$0xff]  ;;  %v6115_v19 = vld [vmem:[%s6032_s5 + $0x50] sm:$0xff]  ;;  %v6121_v21 = vld [vmem:[%s6032_s5 + $0x60] sm:$0xff]  ;;  %p5865_p13 = pnand %p5864_p12, %p5997_p4 }
  0x20   : > { %5384 = vmatprep.mubr.msk.f32.mxu1 %vm256_vm1, %v6049_v8  ;;  %5505 = vmatprep.subr.msk.mxu1 %vm353_vm0, %v6057_v9  ;;  %v6104_v18 = vld [vmem:[%s6032_s5 + $0x108] sm:$0xff]  ;;  %v6118_v20 = vld [vmem:[%s6032_s5 + $0x110] sm:$0xff]  ;;  %v6124_v22 = vld [vmem:[%s6032_s5 + $0x120] sm:$0xff]  ;;  %p5872_p3 = por %p5871_p2, %p5870_p1 }
  0x21   : > { %5555 = vmatprep.subr.msk.mxu0 %vm353_vm0, %v6062_v10  ;;  %5361 = vmatmul.mubr.msk.f32.gmra.mxu0 %vm256_vm1, %v6067_v11  ;;  %v6135_v23 = vld [vmem:[%s6032_s5 + $0x68] sm:$0xff]  ;;  %v6141_v25 = vld [vmem:[%s6032_s5 + $0x78] sm:$0xff]  ;;  %v6155_v27 = vld [vmem:[%s6032_s5 + $0x80] sm:$0xff]  ;;  %p5866_p0 = pneg %p5865_p13 }
  0x22   : > { %5385 = vmatmul.mubr.msk.f32.gmra.mxu1 %vm256_vm1, %v6070_v12  ;;  %5363 = vmatprep.mubr.msk.f32.mxu0 %vm256_vm1, %v6077_v13  ;;  %v6138_v24 = vld [vmem:[%s6032_s5 + $0x128] sm:$0xff]  ;;  %v6144_v26 = vld [vmem:[%s6032_s5 + $0x138] sm:$0xff]  ;;  %v6158_v28 = vld [vmem:[%s6032_s5 + $0x140] sm:$0xff] }
  0x23   : > { %5387 = vmatprep.mubr.msk.f32.mxu1 %vm256_vm1, %v6080_v14  ;;  %v6161_v29 = vld [vmem:[%s6032_s5 + $0x90] sm:$0xff]  ;;  %v6175_v31 = vld [vmem:[%s6032_s5 + $0x98] sm:$0xff]  ;;  %v6181_v33 = vld [vmem:[%s6032_s5 + $0xa8] sm:$0xff]  ;;  %p5873_p5 = pnand %p5872_p3, %p5866_p0 }
  0x24   : > { %v6164_v30 = vld [vmem:[%s6032_s5 + $0x150] sm:$0xff]  ;;  %v6178_v32 = vld [vmem:[%s6032_s5 + $0x158] sm:$0xff]  ;;  %v6184_v34 = vld [vmem:[%s6032_s5 + $0x168] sm:$0xff] }
  0x25   : > { %5364 = vmatmul.mubr.msk.f32.gmra.mxu0 %vm256_vm1, %v6095_v15  ;;  %v6195_v35 = vld [vmem:[%s6032_s5 + $0xb0] sm:$0xff]  ;;  %v646_v37 = vld [vmem:[%s6032_s5 + $0x1] sm:$0xff]  ;;  %v6211_v41 = vld [vmem:[%s6032_s5 + $0x19] sm:$0xff] }
  0x26   : > { %5388 = vmatmul.mubr.msk.f32.gmra.mxu1 %vm256_vm1, %v6098_v16  ;;  %5366 = vmatprep.mubr.msk.f32.mxu0 %vm256_vm1, %v6101_v17  ;;  %v6198_v36 = vld [vmem:[%s6032_s5 + $0x170] sm:$0xff]  ;;  %v1100_v38 = vld [vmem:[%s6032_s5 + $0x2] sm:$0xff]  ;;  %v6214_v42 = vld [vmem:[%s6032_s5 + $0x1a] sm:$0xff] }
  0x27   : > { %5390 = vmatprep.mubr.msk.f32.mxu1 %vm256_vm1, %v6104_v18  ;;  %7634 = vst [vmem:[#allocation6_spill] sm:$0xff] %v6198_v36  ;;  %v647_v39 = vld [vmem:[%s6032_s5 + $0x9] sm:$0xff]  ;;  %7635 = vst [vmem:[#allocation7_spill] sm:$0xff] %v6214_v42  ;;  %v6233_v45 = vld [vmem:[%s6032_s5 + $0x21] sm:$0xff] }
  0x28   : > { %v1101_v40 = vld [vmem:[%s6032_s5 + $0xa] sm:$0xff]  ;;  %v6236_v46 = vld [vmem:[%s6032_s5 + $0x22] sm:$0xff]  ;;  %v6246_v48 = vld [vmem:[%s6032_s5 + $0x32] sm:$0xff] }
  0x29   : > { %5367 = vmatmul.mubr.msk.f32.gmra.mxu0 %vm256_vm1, %v6115_v19  ;;  %7636 = vst [vmem:[#allocation8_spill] sm:$0xff] %v6236_v46  ;;  %v6243_v47 = vld [vmem:[%s6032_s5 + $0x31] sm:$0xff]  ;;  %7637 = vst [vmem:[#allocation9_spill] sm:$0xff] %v6246_v48  ;;  %v6261_v49 = vld [vmem:[%s6032_s5 + $0x39] sm:$0xff] }
  0x2a   : > { %5391 = vmatmul.mubr.msk.f32.gmra.mxu1 %vm256_vm1, %v6118_v20  ;;  %5369 = vmatprep.mubr.msk.f32.mxu0 %vm256_vm1, %v6121_v21  ;;  %v6264_v50 = vld [vmem:[%s6032_s5 + $0x3a] sm:$0xff]  ;;  %v6267_v51 = vld [vmem:[%s6032_s5 + $0x49] sm:$0xff]  ;;  %v6281_v53 = vld [vmem:[%s6032_s5 + $0x51] sm:$0xff] }
  0x2b   : > { %5393 = vmatprep.mubr.msk.f32.mxu1 %vm256_vm1, %v6124_v22  ;;  %7638 = vst [vmem:[#allocation10_spill] sm:$0xff] %v6264_v50  ;;  %v6270_v52 = vld [vmem:[%s6032_s5 + $0x4a] sm:$0xff]  ;;  %v6284_v54 = vld [vmem:[%s6032_s5 + $0x52] sm:$0xff]  ;;  %v6287_v55 = vld [vmem:[%s6032_s5 + $0x61] sm:$0xff] }
  0x2c   : > { %7639 = vst [vmem:[#allocation11_spill] sm:$0xff] %v6270_v52  ;;  %7640 = vst [vmem:[#allocation12_spill] sm:$0xff] %v6284_v54  ;;  %v6290_v56 = vld [vmem:[%s6032_s5 + $0x62] sm:$0xff]  ;;  %v6304_v58 = vld [vmem:[%s6032_s5 + $0x6a] sm:$0xff] }
  0x2d   : > { %5370 = vmatmul.mubr.msk.f32.gmra.mxu0 %vm256_vm1, %v6135_v23  ;;  %7641 = vst [vmem:[#allocation13_spill] sm:$0xff] %v6290_v56  ;;  %v6301_v57 = vld [vmem:[%s6032_s5 + $0x69] sm:$0xff]  ;;  %7642 = vst [vmem:[#allocation14_spill] sm:$0xff] %v6304_v58  ;;  %v6307_v59 = vld [vmem:[%s6032_s5 + $0x79] sm:$0xff] }
  0x2e   : > { %5394 = vmatmul.mubr.msk.f32.gmra.mxu1 %vm256_vm1, %v6138_v24  ;;  %5372 = vmatprep.mubr.msk.f32.mxu0 %vm256_vm1, %v6141_v25  ;;  %v6310_v60 = vld [vmem:[%s6032_s5 + $0x7a] sm:$0xff]  ;;  %v6324_v62 = vld [vmem:[%s6032_s5 + $0x82] sm:$0xff]  ;;  %v6327_v63 = vld [vmem:[%s6032_s5 + $0x91] sm:$0xff] }
  0x2f   : > { %5396 = vmatprep.mubr.msk.f32.mxu1 %vm256_vm1, %v6144_v26  ;;  %7643 = vst [vmem:[#allocation15_spill] sm:$0xff] %v6310_v60  ;;  %v6321_v61 = vld [vmem:[%s6032_s5 + $0x81] sm:$0xff]  ;;  %7644 = vst [vmem:[#allocation16_spill] sm:$0xff] %v6324_v62  ;;  %v6330_v0 = vld [vmem:[%s6032_s5 + $0x92] sm:$0xff] }
  0x30   : > { %7645 = vst [vmem:[#allocation17_spill] sm:$0xff] %v6330_v0  ;;  %v6341_v1 = vld [vmem:[%s6032_s5 + $0x99] sm:$0xff]  ;;  %v6347_v3 = vld [vmem:[%s6032_s5 + $0xa9] sm:$0xff] }
  0x31   : > { %5373 = vmatmul.mubr.msk.f32.gmra.mxu0 %vm256_vm1, %v6155_v27  ;;  %v6344_v2 = vld [vmem:[%s6032_s5 + $0x9a] sm:$0xff]  ;;  %v6350_v5 = vld [vmem:[%s6032_s5 + $0xaa] sm:$0xff] }
  0x32   : > { %5397 = vmatmul.mubr.msk.f32.gmra.mxu1 %vm256_vm1, %v6158_v28  ;;  %5375 = vmatprep.mubr.msk.f32.mxu0 %vm256_vm1, %v6161_v29  ;;  %7646 = vst [vmem:[#allocation18_spill] sm:$0xff] %v6344_v2  ;;  %7647 = vst [vmem:[#allocation19_spill] sm:$0xff] %v6350_v5 }
  0x33   : > { %5399 = vmatprep.mubr.msk.f32.mxu1 %vm256_vm1, %v6164_v30 }
  0x35   : > { %5376 = vmatmul.mubr.msk.f32.gmra.mxu0 %vm256_vm1, %v6175_v31 }
  0x36   : > { %5400 = vmatmul.mubr.msk.f32.gmra.mxu1 %vm256_vm1, %v6178_v32  ;;  %5378 = vmatprep.mubr.msk.f32.mxu0 %vm256_vm1, %v6181_v33 }
  0x37   : > { %5402 = vmatprep.mubr.msk.f32.mxu1 %vm256_vm1, %v6184_v34 }
  0x39   : > { %5379 = vmatmul.mubr.msk.f32.gmra.mxu0 %vm256_vm1, %v6195_v35 }
  0x3a   : > { %5403 = vmatmul.mubr.msk.f32.gmra.mxu1 %vm256_vm1, %v6198_v36  ;;  %5457 = vmatprep.mubr.msk.f32.mxu0 %vm256_vm1, %v1100_v38  ;;  %v6370_v38 = vld [vmem:[%s6032_s5 + $0xc2] sm:$0xff]  ;;  %v6510_v36 = vld [vmem:[%s6032_s5 + $0x16a] sm:$0xff] }
  0x3b   : > { %5407 = vmatprep.mubr.msk.f32.mxu1 %vm256_vm1, %v646_v37  ;;  %v6367_v37 = vld [vmem:[%s6032_s5 + $0xc1] sm:$0xff]  ;;  %7649 = vst [vmem:[#allocation21_spill] sm:$0xff] %v6370_v38  ;;  %7669 = vst [vmem:[#allocation41_spill] sm:$0xff] %v6510_v36 }
  0x3d   : > { %5458 = vmatmul.mubr.msk.f32.vlgmr.msra.gmra.mxu0 %vm256_vm1, %v1101_v40  ;;  %v6384_v40 = vld [vmem:[%s6032_s5 + $0xca] sm:$0xff] }
  0x3e   : > { %5408 = vmatmul.mubr.msk.f32.vlgmr.msra.gmra.mxu1 %vm256_vm1, %v647_v39  ;;  %5556 = vmatpush3.msk.msra.mxu0 %vm353_vm0, %v6062_v10  ;;  %v6364_v10 = vld [vmem:[%s6032_s5 + $0xb2] sm:$0xff]  ;;  %v6381_v39 = vld [vmem:[%s6032_s5 + $0xc9] sm:$0xff]  ;;  %7650 = vst [vmem:[#allocation22_spill] sm:$0xff] %v6384_v40 }
  0x3f   : > { %5506 = vmatpush3.msk.msra.mxu1 %vm353_vm0, %v6057_v9  ;;  %5410 = vmatprep.mubr.msk.f32.mxu1 %vm256_vm1, %v6211_v41  ;;  %v6361_v9 = vld [vmem:[%s6032_s5 + $0xb1] sm:$0xff]  ;;  %7648 = vst [vmem:[#allocation20_spill] sm:$0xff] %v6364_v10 }
  0x40   : > { %5460 = vmatprep.mubr.msk.f32.mxu0 %vm256_vm1, %v6214_v42  ;;  %5605 = vmatprep.subr.msk.mxu1 %vm353_vm0, %v6221_v43  ;;  %v6507_v42 = vld [vmem:[%s6032_s5 + $0x169] sm:$0xff] }
  0x41   : > { %5655 = vmatprep.subr.msk.mxu0 %vm353_vm0, %v6226_v44  ;;  %5461 = vmatmul.mubr.msk.f32.gmra.mxu0 %vm256_vm1, %v6236_v46  ;;  %v6490_v46 = vld [vmem:[%s6032_s5 + $0x152] sm:$0xff] }
  0x42   : > { %5411 = vmatmul.mubr.msk.f32.gmra.mxu1 %vm256_vm1, %v6233_v45  ;;  %5463 = vmatprep.mubr.msk.f32.mxu0 %vm256_vm1, %v6246_v48  ;;  %v6487_v48 = vld [vmem:[%s6032_s5 + $0x151] sm:$0xff]  ;;  %7666 = vst [vmem:[#allocation38_spill] sm:$0xff] %v6490_v46 }
  0x43   : > { %5413 = vmatprep.mubr.msk.f32.mxu1 %vm256_vm1, %v6243_v47  ;;  %7665 = vst [vmem:[#allocation37_spill] sm:$0xff] %v6487_v48 }
  0x45   : > { %5464 = vmatmul.mubr.msk.f32.gmra.mxu0 %vm256_vm1, %v6264_v50  ;;  %v6470_v50 = vld [vmem:[%s6032_s5 + $0x13a] sm:$0xff] }
  0x46   : > { %5414 = vmatmul.mubr.msk.f32.gmra.mxu1 %vm256_vm1, %v6261_v49  ;;  %5466 = vmatprep.mubr.msk.f32.mxu0 %vm256_vm1, %v6270_v52  ;;  %v6467_v52 = vld [vmem:[%s6032_s5 + $0x139] sm:$0xff]  ;;  %7662 = vst [vmem:[#allocation34_spill] sm:$0xff] %v6470_v50 }
  0x47   : > { %5416 = vmatprep.mubr.msk.f32.mxu1 %vm256_vm1, %v6267_v51  ;;  %7661 = vst [vmem:[#allocation33_spill] sm:$0xff] %v6467_v52 }
  0x49   : > { %5467 = vmatmul.mubr.msk.f32.gmra.mxu0 %vm256_vm1, %v6284_v54  ;;  %v6450_v54 = vld [vmem:[%s6032_s5 + $0x122] sm:$0xff] }
  0x4a   : > { %5417 = vmatmul.mubr.msk.f32.gmra.mxu1 %vm256_vm1, %v6281_v53  ;;  %5469 = vmatprep.mubr.msk.f32.mxu0 %vm256_vm1, %v6290_v56  ;;  %v6447_v56 = vld [vmem:[%s6032_s5 + $0x121] sm:$0xff]  ;;  %7658 = vst [vmem:[#allocation30_spill] sm:$0xff] %v6450_v54 }
  0x4b   : > { %5419 = vmatprep.mubr.msk.f32.mxu1 %vm256_vm1, %v6287_v55  ;;  %7657 = vst [vmem:[#allocation29_spill] sm:$0xff] %v6447_v56 }
  0x4d   : > { %5470 = vmatmul.mubr.msk.f32.gmra.mxu0 %vm256_vm1, %v6304_v58  ;;  %v6430_v58 = vld [vmem:[%s6032_s5 + $0x10a] sm:$0xff] }
  0x4e   : > { %5420 = vmatmul.mubr.msk.f32.gmra.mxu1 %vm256_vm1, %v6301_v57  ;;  %5472 = vmatprep.mubr.msk.f32.mxu0 %vm256_vm1, %v6310_v60  ;;  %v6427_v60 = vld [vmem:[%s6032_s5 + $0x109] sm:$0xff]  ;;  %7655 = vst [vmem:[#allocation27_spill] sm:$0xff] %v6430_v58 }
  0x4f   : > { %5422 = vmatprep.mubr.msk.f32.mxu1 %vm256_vm1, %v6307_v59 }
  0x51   : > { %5473 = vmatmul.mubr.msk.f32.gmra.mxu0 %vm256_vm1, %v6324_v62  ;;  %v6410_v62 = vld [vmem:[%s6032_s5 + $0xf2] sm:$0xff] }
  0x52   : > { %5423 = vmatmul.mubr.msk.f32.gmra.mxu1 %vm256_vm1, %v6321_v61  ;;  %5475 = vmatprep.mubr.msk.f32.mxu0 %vm256_vm1, %v6330_v0  ;;  %v6407_v0 = vld [vmem:[%s6032_s5 + $0xf1] sm:$0xff]  ;;  %7653 = vst [vmem:[#allocation25_spill] sm:$0xff] %v6410_v62 }
  0x53   : > { %5425 = vmatprep.mubr.msk.f32.mxu1 %vm256_vm1, %v6327_v63 }
  0x55   : > { %5476 = vmatmul.mubr.msk.f32.gmra.mxu0 %vm256_vm1, %v6344_v2  ;;  %v6390_v2 = vld [vmem:[%s6032_s5 + $0xda] sm:$0xff] }
  0x56   : > { %5426 = vmatmul.mubr.msk.f32.gmra.mxu1 %vm256_vm1, %v6341_v1  ;;  %5478 = vmatprep.mubr.msk.f32.mxu0 %vm256_vm1, %v6350_v5  ;;  %v6387_v5 = vld [vmem:[%s6032_s5 + $0xd9] sm:$0xff]  ;;  %7651 = vst [vmem:[#allocation23_spill] sm:$0xff] %v6390_v2 }
  0x57   : > { %5428 = vmatprep.mubr.msk.f32.mxu1 %vm256_vm1, %v6347_v3 }
  0x59   : > { %5479 = vmatmul.mubr.msk.f32.gmra.mxu0 %vm256_vm1, %v6364_v10  ;;  %v6404_v10 = vld [vmem:[%s6032_s5 + $0xe2] sm:$0xff] }
  0x5a   : > { %5429 = vmatmul.mubr.msk.f32.gmra.mxu1 %vm256_vm1, %v6361_v9  ;;  %5481 = vmatprep.mubr.msk.f32.mxu0 %vm256_vm1, %v6370_v38  ;;  %v6401_v38 = vld [vmem:[%s6032_s5 + $0xe1] sm:$0xff]  ;;  %7652 = vst [vmem:[#allocation24_spill] sm:$0xff] %v6404_v10 }
  0x5b   : > { %5431 = vmatprep.mubr.msk.f32.mxu1 %vm256_vm1, %v6367_v37 }
  0x5d   : > { %5482 = vmatmul.mubr.msk.f32.gmra.mxu0 %vm256_vm1, %v6384_v40  ;;  %v6424_v40 = vld [vmem:[%s6032_s5 + $0xfa] sm:$0xff] }
  0x5e   : > { %5432 = vmatmul.mubr.msk.f32.gmra.mxu1 %vm256_vm1, %v6381_v39  ;;  %5484 = vmatprep.mubr.msk.f32.mxu0 %vm256_vm1, %v6390_v2  ;;  %v6421_v2 = vld [vmem:[%s6032_s5 + $0xf9] sm:$0xff]  ;;  %7654 = vst [vmem:[#allocation26_spill] sm:$0xff] %v6424_v40 }
  0x5f   : > { %5434 = vmatprep.mubr.msk.f32.mxu1 %vm256_vm1, %v6387_v5 }
  0x61   : > { %5485 = vmatmul.mubr.msk.f32.gmra.mxu0 %vm256_vm1, %v6404_v10  ;;  %v6444_v10 = vld [vmem:[%s6032_s5 + $0x112] sm:$0xff] }
  0x62   : > { %5435 = vmatmul.mubr.msk.f32.gmra.mxu1 %vm256_vm1, %v6401_v38  ;;  %5487 = vmatprep.mubr.msk.f32.mxu0 %vm256_vm1, %v6410_v62  ;;  %v6441_v62 = vld [vmem:[%s6032_s5 + $0x111] sm:$0xff]  ;;  %7656 = vst [vmem:[#allocation28_spill] sm:$0xff] %v6444_v10 }
  0x63   : > { %5437 = vmatprep.mubr.msk.f32.mxu1 %vm256_vm1, %v6407_v0 }
  0x65   : > { %5488 = vmatmul.mubr.msk.f32.gmra.mxu0 %vm256_vm1, %v6424_v40  ;;  %v6464_v40 = vld [vmem:[%s6032_s5 + $0x12a] sm:$0xff] }
  0x66   : > { %5438 = vmatmul.mubr.msk.f32.gmra.mxu1 %vm256_vm1, %v6421_v2  ;;  %5490 = vmatprep.mubr.msk.f32.mxu0 %vm256_vm1, %v6430_v58  ;;  %v6461_v58 = vld [vmem:[%s6032_s5 + $0x129] sm:$0xff]  ;;  %7660 = vst [vmem:[#allocation32_spill] sm:$0xff] %v6464_v40 }
  0x67   : > { %5440 = vmatprep.mubr.msk.f32.mxu1 %vm256_vm1, %v6427_v60  ;;  %7659 = vst [vmem:[#allocation31_spill] sm:$0xff] %v6461_v58 }
  0x69   : > { %5491 = vmatmul.mubr.msk.f32.gmra.mxu0 %vm256_vm1, %v6444_v10  ;;  %v6484_v10 = vld [vmem:[%s6032_s5 + $0x142] sm:$0xff] }
  0x6a   : > { %5441 = vmatmul.mubr.msk.f32.gmra.mxu1 %vm256_vm1, %v6441_v62  ;;  %5493 = vmatprep.mubr.msk.f32.mxu0 %vm256_vm1, %v6450_v54  ;;  %v6481_v54 = vld [vmem:[%s6032_s5 + $0x141] sm:$0xff]  ;;  %7664 = vst [vmem:[#allocation36_spill] sm:$0xff] %v6484_v10 }
  0x6b   : > { %5443 = vmatprep.mubr.msk.f32.mxu1 %vm256_vm1, %v6447_v56  ;;  %7663 = vst [vmem:[#allocation35_spill] sm:$0xff] %v6481_v54 }
  0x6d   : > { %5494 = vmatmul.mubr.msk.f32.gmra.mxu0 %vm256_vm1, %v6464_v40  ;;  %v6504_v40 = vld [vmem:[%s6032_s5 + $0x15a] sm:$0xff] }
  0x6e   : > { %5444 = vmatmul.mubr.msk.f32.gmra.mxu1 %vm256_vm1, %v6461_v58  ;;  %5496 = vmatprep.mubr.msk.f32.mxu0 %vm256_vm1, %v6470_v50  ;;  %v6501_v50 = vld [vmem:[%s6032_s5 + $0x159] sm:$0xff]  ;;  %7668 = vst [vmem:[#allocation40_spill] sm:$0xff] %v6504_v40 }
  0x6f   : > { %5446 = vmatprep.mubr.msk.f32.mxu1 %vm256_vm1, %v6467_v52  ;;  %7667 = vst [vmem:[#allocation39_spill] sm:$0xff] %v6501_v50 }
  0x71   : > { %5497 = vmatmul.mubr.msk.f32.gmra.mxu0 %vm256_vm1, %v6484_v10  ;;  %v6524_v10 = vld [vmem:[%s6032_s5 + $0x172] sm:$0xff] }
  0x72   : > { %5447 = vmatmul.mubr.msk.f32.gmra.mxu1 %vm256_vm1, %v6481_v54  ;;  %5499 = vmatprep.mubr.msk.f32.mxu0 %vm256_vm1, %v6490_v46  ;;  %v6521_v46 = vld [vmem:[%s6032_s5 + $0x171] sm:$0xff]  ;;  %7670 = vst [vmem:[#allocation42_spill] sm:$0xff] %v6524_v10 }
  0x73   : > { %5449 = vmatprep.mubr.msk.f32.mxu1 %vm256_vm1, %v6487_v48 }
  0x75   : > { %5500 = vmatmul.mubr.msk.f32.gmra.mxu0 %vm256_vm1, %v6504_v40 }
  0x76   : > { %5450 = vmatmul.mubr.msk.f32.gmra.mxu1 %vm256_vm1, %v6501_v50  ;;  %5502 = vmatprep.mubr.msk.f32.mxu0 %vm256_vm1, %v6510_v36  ;;  %v6541_v36 = vld [vmem:[%s7563_s1 + $0x1c] sm:$0xf] }
  0x77   : > { %5452 = vmatprep.mubr.msk.f32.mxu1 %vm256_vm1, %v6507_v42 }
  0x79   : > { %5503 = vmatmul.mubr.msk.f32.gmra.mxu0 %vm256_vm1, %v6524_v10  ;;  %v6546_v10 = vld [vmem:[%s7563_s1 + $0x20] sm:$0xf] }
  0x7a   : > { %5453 = vmatmul.mubr.msk.f32.gmra.mxu1 %vm256_vm1, %v6521_v46  ;;  %5557 = vmatprep.mubr.msk.f32.mxu0 %vm256_vm1, %v6211_v41  ;;  %v7672_v41 = vld [vmem:[#allocation6_spill] sm:$0xff] }
  0x7b   : > { %5507 = vmatprep.mubr.msk.f32.mxu1 %vm256_vm1, %v6046_v7  ;;  %v6665_v7 = vld [vmem:[%s6032_s5 + $0x180] sm:$0xff] }
  0x7d   : > { %5558 = vmatmul.mubr.msk.f32.vlgmr.msra.gmra.mxu0 %vm256_vm1, %v6233_v45  ;;  %v7675_v45 = vld [vmem:[#allocation8_spill] sm:$0xff] }
  0x7e   : > { %5508 = vmatmul.mubr.msk.f32.vlgmr.msra.gmra.mxu1 %vm256_vm1, %v6067_v11  ;;  %5656 = vmatpush3.msk.msra.mxu0 %vm353_vm0, %v6226_v44  ;;  %v6668_v11 = vld [vmem:[%s6032_s5 + $0x181] sm:$0xff]  ;;  %v6682_v44 = vld [vmem:[%s6032_s5 + $0x189] sm:$0xff] }
  0x7f   : > { %5606 = vmatpush3.msk.msra.mxu1 %vm353_vm0, %v6221_v43  ;;  %5510 = vmatprep.mubr.msk.f32.mxu1 %vm256_vm1, %v6077_v13  ;;  %7671 = vst [vmem:[#allocation43_spill] sm:$0xff] %v6668_v11  ;;  %v6679_v43 = vld [vmem:[%s6032_s5 + $0x188] sm:$0xff]  ;;  %7673 = vst [vmem:[#allocation6_spill] sm:$0xff] %v6682_v44 }
  0x80   : > { %5560 = vmatprep.mubr.msk.f32.mxu0 %vm256_vm1, %v6243_v47  ;;  %5705 = vmatprep.subr.msk.mxu1 %vm353_vm0, %v6541_v36 }
  0x81   : > { %5755 = vmatprep.subr.msk.mxu0 %vm353_vm0, %v6546_v10  ;;  %5561 = vmatmul.mubr.msk.f32.gmra.mxu0 %vm256_vm1, %v6261_v49 }
  0x82   : > { %5511 = vmatmul.mubr.msk.f32.gmra.mxu1 %vm256_vm1, %v6095_v15  ;;  %5563 = vmatprep.mubr.msk.f32.mxu0 %vm256_vm1, %v6267_v51 }
  0x83   : > { %5513 = vmatprep.mubr.msk.f32.mxu1 %vm256_vm1, %v6101_v17 }
  0x85   : > { %5564 = vmatmul.mubr.msk.f32.gmra.mxu0 %vm256_vm1, %v6281_v53 }
  0x86   : > { %5514 = vmatmul.mubr.msk.f32.gmra.mxu1 %vm256_vm1, %v6115_v19  ;;  %5566 = vmatprep.mubr.msk.f32.mxu0 %vm256_vm1, %v6287_v55 }
  0x87   : > { %5516 = vmatprep.mubr.msk.f32.mxu1 %vm256_vm1, %v6121_v21 }
  0x89   : > { %5567 = vmatmul.mubr.msk.f32.gmra.mxu0 %vm256_vm1, %v6301_v57 }
  0x8a   : > { %5517 = vmatmul.mubr.msk.f32.gmra.mxu1 %vm256_vm1, %v6135_v23  ;;  %5569 = vmatprep.mubr.msk.f32.mxu0 %vm256_vm1, %v6307_v59 }
  0x8b   : > { %5519 = vmatprep.mubr.msk.f32.mxu1 %vm256_vm1, %v6141_v25 }
  0x8d   : > { %5570 = vmatmul.mubr.msk.f32.gmra.mxu0 %vm256_vm1, %v6321_v61 }
  0x8e   : > { %5520 = vmatmul.mubr.msk.f32.gmra.mxu1 %vm256_vm1, %v6155_v27  ;;  %5572 = vmatprep.mubr.msk.f32.mxu0 %vm256_vm1, %v6327_v63 }
  0x8f   : > { %5522 = vmatprep.mubr.msk.f32.mxu1 %vm256_vm1, %v6161_v29 }
  0x91   : > { %5573 = vmatmul.mubr.msk.f32.gmra.mxu0 %vm256_vm1, %v6341_v1 }
  0x92   : > { %5523 = vmatmul.mubr.msk.f32.gmra.mxu1 %vm256_vm1, %v6175_v31  ;;  %5575 = vmatprep.mubr.msk.f32.mxu0 %vm256_vm1, %v6347_v3 }
  0x93   : > { %5525 = vmatprep.mubr.msk.f32.mxu1 %vm256_vm1, %v6181_v33 }
  0x95   : > { %5576 = vmatmul.mubr.msk.f32.gmra.mxu0 %vm256_vm1, %v6361_v9 }
  0x96   : > { %5526 = vmatmul.mubr.msk.f32.gmra.mxu1 %vm256_vm1, %v6195_v35  ;;  %5578 = vmatprep.mubr.msk.f32.mxu0 %vm256_vm1, %v6367_v37 }
  0x97   : > { %5528 = vmatprep.mubr.msk.f32.mxu1 %vm256_vm1, %v6036_v4 }
  0x99   : > { %5579 = vmatmul.mubr.msk.f32.gmra.mxu0 %vm256_vm1, %v6381_v39 }
  0x9a   : > { %5529 = vmatmul.mubr.msk.f32.gmra.mxu1 %vm256_vm1, %v6043_v6  ;;  %5581 = vmatprep.mubr.msk.f32.mxu0 %vm256_vm1, %v6387_v5 }
  0x9b   : > { %5531 = vmatprep.mubr.msk.f32.mxu1 %vm256_vm1, %v6049_v8 }
  0x9d   : > { %5582 = vmatmul.mubr.msk.f32.gmra.mxu0 %vm256_vm1, %v6401_v38 }
  0x9e   : > { %5532 = vmatmul.mubr.msk.f32.gmra.mxu1 %vm256_vm1, %v6070_v12  ;;  %5584 = vmatprep.mubr.msk.f32.mxu0 %vm256_vm1, %v6407_v0 }
  0x9f   : > { %5534 = vmatprep.mubr.msk.f32.mxu1 %vm256_vm1, %v6080_v14 }
  0xa1   : > { %5585 = vmatmul.mubr.msk.f32.gmra.mxu0 %vm256_vm1, %v6421_v2 }
  0xa2   : > { %5535 = vmatmul.mubr.msk.f32.gmra.mxu1 %vm256_vm1, %v6098_v16  ;;  %5587 = vmatprep.mubr.msk.f32.mxu0 %vm256_vm1, %v6427_v60 }
  0xa3   : > { %5537 = vmatprep.mubr.msk.f32.mxu1 %vm256_vm1, %v6104_v18 }
  0xa5   : > { %5588 = vmatmul.mubr.msk.f32.gmra.mxu0 %vm256_vm1, %v6441_v62 }
  0xa6   : > { %5538 = vmatmul.mubr.msk.f32.gmra.mxu1 %vm256_vm1, %v6118_v20  ;;  %5590 = vmatprep.mubr.msk.f32.mxu0 %vm256_vm1, %v6447_v56 }
  0xa7   : > { %5540 = vmatprep.mubr.msk.f32.mxu1 %vm256_vm1, %v6124_v22 }
  0xa9   : > { %5591 = vmatmul.mubr.msk.f32.gmra.mxu0 %vm256_vm1, %v6461_v58 }
  0xaa   : > { %5541 = vmatmul.mubr.msk.f32.gmra.mxu1 %vm256_vm1, %v6138_v24  ;;  %5593 = vmatprep.mubr.msk.f32.mxu0 %vm256_vm1, %v6467_v52  ;;  %v7698_v52 = vld [vmem:[#allocation28_spill] sm:$0xff] }
  0xab   : > { %5543 = vmatprep.mubr.msk.f32.mxu1 %vm256_vm1, %v6144_v26 }
  0xad   : > { %5594 = vmatmul.mubr.msk.f32.gmra.mxu0 %vm256_vm1, %v6481_v54 }
  0xae   : > { %5544 = vmatmul.mubr.msk.f32.gmra.mxu1 %vm256_vm1, %v6158_v28  ;;  %5596 = vmatprep.mubr.msk.f32.mxu0 %vm256_vm1, %v6487_v48 }
  0xaf   : > { %5546 = vmatprep.mubr.msk.f32.mxu1 %vm256_vm1, %v6164_v30 }
  0xb1   : > { %5597 = vmatmul.mubr.msk.f32.gmra.mxu0 %vm256_vm1, %v6501_v50 }
  0xb2   : > { %5547 = vmatmul.mubr.msk.f32.gmra.mxu1 %vm256_vm1, %v6178_v32  ;;  %5599 = vmatprep.mubr.msk.f32.mxu0 %vm256_vm1, %v6507_v42  ;;  %v7674_v42 = vld [vmem:[#allocation7_spill] sm:$0xff] }
  0xb3   : > { %5549 = vmatprep.mubr.msk.f32.mxu1 %vm256_vm1, %v6184_v34 }
  0xb5   : > { %5600 = vmatmul.mubr.msk.f32.gmra.mxu0 %vm256_vm1, %v6521_v46  ;;  %v7676_v46 = vld [vmem:[#allocation9_spill] sm:$0xff] }
  0xb6   : > { %5550 = vmatmul.mubr.msk.f32.gmra.mxu1 %vm256_vm1, %v7672_v41  ;;  %5602 = vmatprep.mubr.msk.f32.mxu0 %vm256_vm1, %v6668_v11  ;;  %v7694_v11 = vld [vmem:[#allocation26_spill] sm:$0xff] }
  0xb7   : > { %5552 = vmatprep.mubr.msk.f32.mxu1 %vm256_vm1, %v6665_v7 }
  0xb9   : > { %5603 = vmatmul.mubr.msk.f32.gmra.mxu0 %vm256_vm1, %v6682_v44 }
  0xba   : > { %5553 = vmatmul.mubr.msk.f32.gmra.mxu1 %vm256_vm1, %v6679_v43  ;;  %5657 = vmatprep.mubr.msk.f32.mxu0 %vm256_vm1, %v6077_v13  ;;  %v7678_v13 = vld [vmem:[#allocation11_spill] sm:$0xff] }
  0xbb   : > { %5607 = vmatprep.mubr.msk.f32.mxu1 %vm256_vm1, %v7674_v42  ;;  %v7677_v42 = vld [vmem:[#allocation10_spill] sm:$0xff] }
  0xbd   : > { %5658 = vmatmul.mubr.msk.f32.vlgmr.msra.gmra.mxu0 %vm256_vm1, %v6095_v15  ;;  %v7679_v15 = vld [vmem:[#allocation12_spill] sm:$0xff] }
  0xbe   : > { %5608 = vmatmul.mubr.msk.f32.vlgmr.msra.gmra.mxu1 %vm256_vm1, %v7675_v45  ;;  %5756 = vmatpush3.msk.msra.mxu0 %vm353_vm0, %v6546_v10  ;;  %v7691_v10 = vld [vmem:[#allocation24_spill] sm:$0xff] }
  0xbf   : > { %5706 = vmatpush3.msk.msra.mxu1 %vm353_vm0, %v6541_v36  ;;  %5610 = vmatprep.mubr.msk.f32.mxu1 %vm256_vm1, %v7676_v46  ;;  %v7680_v36 = vld [vmem:[#allocation13_spill] sm:$0xff] }
  0xc0   : > { %5660 = vmatprep.mubr.msk.f32.mxu0 %vm256_vm1, %v6101_v17  ;;  %v7681_v17 = vld [vmem:[#allocation14_spill] sm:$0xff] }
  0xc1   : > { %5661 = vmatmul.mubr.msk.f32.gmra.mxu0 %vm256_vm1, %v6115_v19  ;;  %v7682_v19 = vld [vmem:[#allocation15_spill] sm:$0xff] }
  0xc2   : > { %5611 = vmatmul.mubr.msk.f32.gmra.mxu1 %vm256_vm1, %v7677_v42  ;;  %5663 = vmatprep.mubr.msk.f32.mxu0 %vm256_vm1, %v6121_v21  ;;  %v7683_v21 = vld [vmem:[#allocation16_spill] sm:$0xff] }
  0xc3   : > { %5613 = vmatprep.mubr.msk.f32.mxu1 %vm256_vm1, %v7678_v13 }
  0xc5   : > { %5664 = vmatmul.mubr.msk.f32.gmra.mxu0 %vm256_vm1, %v6135_v23  ;;  %v7684_v23 = vld [vmem:[#allocation17_spill] sm:$0xff] }
  0xc6   : > { %5614 = vmatmul.mubr.msk.f32.gmra.mxu1 %vm256_vm1, %v7679_v15  ;;  %5666 = vmatprep.mubr.msk.f32.mxu0 %vm256_vm1, %v6141_v25  ;;  %v7685_v25 = vld [vmem:[#allocation18_spill] sm:$0xff] }
  0xc7   : > { %5616 = vmatprep.mubr.msk.f32.mxu1 %vm256_vm1, %v7680_v36 }
  0xc9   : > { %5667 = vmatmul.mubr.msk.f32.gmra.mxu0 %vm256_vm1, %v6155_v27  ;;  %v7686_v27 = vld [vmem:[#allocation19_spill] sm:$0xff] }
  0xca   : > { %5617 = vmatmul.mubr.msk.f32.gmra.mxu1 %vm256_vm1, %v7681_v17  ;;  %5669 = vmatprep.mubr.msk.f32.mxu0 %vm256_vm1, %v6161_v29  ;;  %v7687_v29 = vld [vmem:[#allocation20_spill] sm:$0xff] }
  0xcb   : > { %5619 = vmatprep.mubr.msk.f32.mxu1 %vm256_vm1, %v7682_v19 }
  0xcd   : > { %5670 = vmatmul.mubr.msk.f32.gmra.mxu0 %vm256_vm1, %v6175_v31  ;;  %v7688_v31 = vld [vmem:[#allocation21_spill] sm:$0xff] }
  0xce   : > { %5620 = vmatmul.mubr.msk.f32.gmra.mxu1 %vm256_vm1, %v7683_v21  ;;  %5672 = vmatprep.mubr.msk.f32.mxu0 %vm256_vm1, %v6181_v33  ;;  %v7689_v33 = vld [vmem:[#allocation22_spill] sm:$0xff] }
  0xcf   : > { %5622 = vmatprep.mubr.msk.f32.mxu1 %vm256_vm1, %v7684_v23 }
  0xd1   : > { %5673 = vmatmul.mubr.msk.f32.gmra.mxu0 %vm256_vm1, %v6195_v35  ;;  %v7690_v35 = vld [vmem:[#allocation23_spill] sm:$0xff] }
  0xd2   : > { %5623 = vmatmul.mubr.msk.f32.gmra.mxu1 %vm256_vm1, %v7685_v25  ;;  %5675 = vmatprep.mubr.msk.f32.mxu0 %vm256_vm1, %v6036_v4 }
  0xd3   : > { %5625 = vmatprep.mubr.msk.f32.mxu1 %vm256_vm1, %v7686_v27 }
  0xd5   : > { %5676 = vmatmul.mubr.msk.f32.gmra.mxu0 %vm256_vm1, %v6043_v6 }
  0xd6   : > { %5626 = vmatmul.mubr.msk.f32.gmra.mxu1 %vm256_vm1, %v7687_v29  ;;  %5678 = vmatprep.mubr.msk.f32.mxu0 %vm256_vm1, %v6049_v8  ;;  %v7692_v8 = vld [vmem:[#allocation25_spill] sm:$0xff] }
  0xd7   : > { %5628 = vmatprep.mubr.msk.f32.mxu1 %vm256_vm1, %v7688_v31 }
  0xd9   : > { %5679 = vmatmul.mubr.msk.f32.gmra.mxu0 %vm256_vm1, %v6070_v12 }
  0xda   : > { %5629 = vmatmul.mubr.msk.f32.gmra.mxu1 %vm256_vm1, %v7689_v33  ;;  %5681 = vmatprep.mubr.msk.f32.mxu0 %vm256_vm1, %v6080_v14 }
  0xdb   : > { %5631 = vmatprep.mubr.msk.f32.mxu1 %vm256_vm1, %v7690_v35 }
  0xdd   : > { %v6760_v4 = vpop.f32.mrf.mxu0  ;;  %5682 = vmatmul.mubr.msk.f32.gmra.mxu0 %vm256_vm1, %v6098_v16  ;;  %v7695_v16 = vld [vmem:[#allocation27_spill] sm:$0xff] }
  0xde   : > { %v6762_v6 = vpop.f32.mrf.mxu1  ;;  %5632 = vmatmul.mubr.msk.f32.gmra.mxu1 %vm256_vm1, %v7691_v10  ;;  %5684 = vmatprep.mubr.msk.f32.mxu0 %vm256_vm1, %v6104_v18 }
  0xdf   : > { %5634 = vmatprep.mubr.msk.f32.mxu1 %vm256_vm1, %v7692_v8  ;;  %v6772_v12 = vpop.f32.mrf.mxu0 }
  0xe0   : > { %v6774_v45 = vpop.f32.mrf.mxu1 }
  0xe1   : > { %v6776_v14 = vpop.f32.mrf.mxu0  ;;  %5685 = vmatmul.mubr.msk.f32.gmra.mxu0 %vm256_vm1, %v6118_v20  ;;  %v7699_v20 = vld [vmem:[#allocation30_spill] sm:$0xff] }
  0xe2   : > { %v6778_v44 = vpop.f32.mrf.mxu1  ;;  %5635 = vmatmul.mubr.msk.f32.gmra.mxu1 %vm256_vm1, %v7694_v11  ;;  %5687 = vmatprep.mubr.msk.f32.mxu0 %vm256_vm1, %v6124_v22 }
  0xe3   : > { %7693 = vst [vmem:[#allocation7_spill] sm:$0xff] %v6778_v44  ;;  %5637 = vmatprep.mubr.msk.f32.mxu1 %vm256_vm1, %v7695_v16  ;;  %v6788_v18 = vpop.f32.mrf.mxu0  ;;  %v7706_v44 = vld [vmem:[#allocation36_spill] sm:$0xff] }
  0xe4   : > { %v6790_v50 = vpop.f32.mrf.mxu1 }
  0xe5   : > { %7696 = vst [vmem:[#allocation8_spill] sm:$0xff] %v6790_v50  ;;  %v6792_v48 = vpop.f32.mrf.mxu0  ;;  %5688 = vmatmul.mubr.msk.f32.gmra.mxu0 %vm256_vm1, %v6138_v24  ;;  %v7703_v24 = vld [vmem:[#allocation34_spill] sm:$0xff] }
  0xe6   : > { %v6794_v54 = vpop.f32.mrf.mxu1  ;;  %5638 = vmatmul.mubr.msk.f32.gmra.mxu1 %vm256_vm1, %v7698_v52  ;;  %5690 = vmatprep.mubr.msk.f32.mxu0 %vm256_vm1, %v6144_v26 }
  0xe7   : > { %7697 = vst [vmem:[#allocation9_spill] sm:$0xff] %v6794_v54  ;;  %5640 = vmatprep.mubr.msk.f32.mxu1 %vm256_vm1, %v7699_v20  ;;  %v6804_v22 = vpop.f32.mrf.mxu0  ;;  %v7702_v54 = vld [vmem:[#allocation32_spill] sm:$0xff] }
  0xe8   : > { %v6806_v58 = vpop.f32.mrf.mxu1 }
  0xe9   : > { %7700 = vst [vmem:[#allocation10_spill] sm:$0xff] %v6806_v58  ;;  %v6808_v50 = vpop.f32.mrf.mxu0  ;;  %5691 = vmatmul.mubr.msk.f32.gmra.mxu0 %vm256_vm1, %v6158_v28  ;;  %v7707_v28 = vld [vmem:[#allocation38_spill] sm:$0xff] }
  0xea   : > { %v6810_v56 = vpop.f32.mrf.mxu1  ;;  %5641 = vmatmul.mubr.msk.f32.gmra.mxu1 %vm256_vm1, %v7702_v54  ;;  %5693 = vmatprep.mubr.msk.f32.mxu0 %vm256_vm1, %v6164_v30 }
  0xeb   : > { %7701 = vst [vmem:[#allocation11_spill] sm:$0xff] %v6810_v56  ;;  %5643 = vmatprep.mubr.msk.f32.mxu1 %vm256_vm1, %v7703_v24  ;;  %v6820_v26 = vpop.f32.mrf.mxu0 }
  0xec   : > { %v6822_v20 = vpop.f32.mrf.mxu1 }
  0xed   : > { %7704 = vst [vmem:[#allocation12_spill] sm:$0xff] %v6822_v20  ;;  %v6824_v58 = vpop.f32.mrf.mxu0  ;;  %5694 = vmatmul.mubr.msk.f32.gmra.mxu0 %vm256_vm1, %v6178_v32  ;;  %v7710_v32 = vld [vmem:[#allocation41_spill] sm:$0xff] }
  0xee   : > { %v6826_v56 = vpop.f32.mrf.mxu1  ;;  %5644 = vmatmul.mubr.msk.f32.gmra.mxu1 %vm256_vm1, %v7706_v44  ;;  %5696 = vmatprep.mubr.msk.f32.mxu0 %vm256_vm1, %v6184_v34 }
  0xef   : > { %7705 = vst [vmem:[#allocation13_spill] sm:$0xff] %v6826_v56  ;;  %5646 = vmatprep.mubr.msk.f32.mxu1 %vm256_vm1, %v7707_v28  ;;  %v6836_v30 = vpop.f32.mrf.mxu0  ;;  %v6857_v28 = vld [vmem:[%s6032_s5 + $0x182] sm:$0xff] }
  0xf0   : > { %v6838_v20 = vpop.f32.mrf.mxu1  ;;  %7712 = vst [vmem:[#allocation17_spill] sm:$0xff] %v6857_v28 }
  0xf1   : > { %7708 = vst [vmem:[#allocation14_spill] sm:$0xff] %v6838_v20  ;;  %v6840_v24 = vpop.f32.mrf.mxu0  ;;  %5697 = vmatmul.mubr.msk.f32.gmra.mxu0 %vm256_vm1, %v7672_v41  ;;  %v4887_v41 = vld [vmem:[%s6032_s5 + $0x1a0] sm:$0xff] }
  0xf2   : > { %v6842_v56 = vpop.f32.mrf.mxu1  ;;  %5647 = vmatmul.mubr.msk.f32.gmra.mxu1 %vm256_vm1, %v6504_v40  ;;  %5699 = vmatprep.mubr.msk.f32.mxu0 %vm256_vm1, %v6665_v7  ;;  %v7714_v40 = vld [vmem:[#allocation42_spill] sm:$0xff] }
  0xf3   : > { %7709 = vst [vmem:[#allocation15_spill] sm:$0xff] %v6842_v56  ;;  %5649 = vmatprep.mubr.msk.f32.mxu1 %vm256_vm1, %v7710_v32  ;;  %v6852_v34 = vpop.f32.mrf.mxu0  ;;  %v4886_v56 = vld [vmem:[%s6032_s5 + $0x198] sm:$0xff]  ;;  %v6872_v7 = vld [vmem:[%s6032_s5 + $0x18a] sm:$0xff] }
  0xf4   : > { %v6854_v20 = vpop.f32.mrf.mxu1  ;;  %7715 = vst [vmem:[#allocation19_spill] sm:$0xff] %v6872_v7 }
  0xf5   : > { %7711 = vst [vmem:[#allocation16_spill] sm:$0xff] %v6854_v20  ;;  %v6860_v44 = vpop.f32.mrf.mxu0  ;;  %5700 = vmatmul.mubr.msk.f32.gmra.mxu0 %vm256_vm1, %v6679_v43 }
  0xf6   : > { %v6862_v54 = vpop.f32.mrf.mxu1  ;;  %5650 = vmatmul.mubr.msk.f32.gmra.mxu1 %vm256_vm1, %v7714_v40  ;;  %5702 = vmatprep.mubr.msk.f32.mxu0 %vm256_vm1, %v4886_v56 }
  0xf7   : > { %7713 = vst [vmem:[#allocation18_spill] sm:$0xff] %v6862_v54  ;;  %5652 = vmatprep.mubr.msk.f32.mxu1 %vm256_vm1, %v6857_v28  ;;  %v6875_v32 = vpop.f32.mrf.mxu0 }
  0xf8   : > { %v6877_v20 = vpop.f32.mrf.mxu1 }
  0xf9   : > { %7716 = vst [vmem:[#allocation20_spill] sm:$0xff] %v6877_v20  ;;  %v6879_v52 = vpop.f32.mrf.mxu0  ;;  %5703 = vmatmul.mubr.msk.f32.gmra.mxu0 %vm256_vm1, %v4887_v41 }
  0xfa   : > { %v6881_v54 = vpop.f32.mrf.mxu1  ;;  %5653 = vmatmul.mubr.msk.f32.gmra.mxu1 %vm256_vm1, %v6872_v7  ;;  %5757 = vmatprep.mubr.msk.f32.mxu0 %vm256_vm1, %v7676_v46 }
  0xfb   : > { %7717 = vst [vmem:[#allocation21_spill] sm:$0xff] %v6881_v54  ;;  %5707 = vmatprep.mubr.msk.f32.mxu1 %vm256_vm1, %v6243_v47  ;;  %v6890_v56 = vpop.f32.mrf.mxu0 }
  0xfc   : > { %v6892_v40 = vpop.f32.mrf.mxu1 }
  0xfd   : > { %7718 = vst [vmem:[#allocation22_spill] sm:$0xff] %v6892_v40  ;;  %v5459_v20 = vpop.f32.mrf.mxu0  ;;  %5758 = vmatmul.mubr.msk.f32.vlgmr.msra.gmra.mxu0 %vm256_vm1, %v7677_v42 }
  0xfe   : > { %v5409_v43 = vpop.f32.mrf.mxu1  ;;  %5708 = vmatmul.mubr.msk.f32.vlgmr.msra.gmra.mxu1 %vm256_vm1, %v6261_v49  ;;  %5760 = vmatprep.mubr.msk.f32.mxu0 %vm256_vm1, %v7678_v13 }
  0xff   : > { %v1037_v41 = vadd.f32 %v5409_v43, %v6760_v4  ;;  %5710 = vmatprep.mubr.msk.f32.mxu1 %vm256_vm1, %v6267_v51  ;;  %v1331_v46 = vpop.f32.mrf.mxu0 }
 0x100   : > { %v877_v47 = vpop.f32.mrf.mxu1 }
 0x101   : > { %v6903_v54 = vadd.f32 %v5459_v20, %v1037_v41  ;;  %v1036_v40 = vadd.f32 %v877_v47, %v6772_v12  ;;  %v5462_v28 = vpop.f32.mrf.mxu0  ;;  %5761 = vmatmul.mubr.msk.f32.gmra.mxu0 %vm256_vm1, %v7679_v15 }
 0x102   : > { %v5412_v7 = vpop.f32.mrf.mxu1  ;;  %5711 = vmatmul.mubr.msk.f32.gmra.mxu1 %vm256_vm1, %v6281_v53  ;;  %5763 = vmatprep.mubr.msk.f32.mxu0 %vm256_vm1, %v7680_v36 }
 0x103   : > { %v6910_v49 = vadd.f32 %v1331_v46, %v1036_v40  ;;  %v1039_v51 = vadd.f32 %v5412_v7, %v6776_v14  ;;  %5713 = vmatprep.mubr.msk.f32.mxu1 %vm256_vm1, %v6287_v55  ;;  %v1341_v13 = vpop.f32.mrf.mxu0 }
 0x104   : > { %v887_v42 = vpop.f32.mrf.mxu1 }
 0x105   : > { %v6917_v4 = vadd.f32 %v5462_v28, %v1039_v51  ;;  %v1038_v12 = vadd.f32 %v887_v42, %v6788_v18  ;;  %v5465_v20 = vpop.f32.mrf.mxu0  ;;  %5764 = vmatmul.mubr.msk.f32.gmra.mxu0 %vm256_vm1, %v7681_v17 }
 0x106   : > { %v5415_v53 = vpop.f32.mrf.mxu1  ;;  %5714 = vmatmul.mubr.msk.f32.gmra.mxu1 %vm256_vm1, %v6301_v57  ;;  %5766 = vmatprep.mubr.msk.f32.mxu0 %vm256_vm1, %v7682_v19 }
 0x107   : > { %v6924_v15 = vadd.f32 %v1341_v13, %v1038_v12  ;;  %v1041_v55 = vadd.f32 %v5415_v53, %v6792_v48  ;;  %5716 = vmatprep.mubr.msk.f32.mxu1 %vm256_vm1, %v6307_v59  ;;  %v1351_v14 = vpop.f32.mrf.mxu0 }
 0x108   : > { %v897_v36 = vpop.f32.mrf.mxu1 }
 0x109   : > { %v6931_v18 = vadd.f32 %v5465_v20, %v1041_v55  ;;  %v1040_v28 = vadd.f32 %v897_v36, %v6804_v22  ;;  %v5468_v7 = vpop.f32.mrf.mxu0  ;;  %5767 = vmatmul.mubr.msk.f32.gmra.mxu0 %vm256_vm1, %v7683_v21 }
 0x10a   : > { %v5418_v57 = vpop.f32.mrf.mxu1  ;;  %5717 = vmatmul.mubr.msk.f32.gmra.mxu1 %vm256_vm1, %v6321_v61  ;;  %5769 = vmatprep.mubr.msk.f32.mxu0 %vm256_vm1, %v7684_v23 }
 0x10b   : > { %v6938_v48 = vadd.f32 %v1351_v14, %v1040_v28  ;;  %v1043_v59 = vadd.f32 %v5418_v57, %v6808_v50  ;;  %5719 = vmatprep.mubr.msk.f32.mxu1 %vm256_vm1, %v6327_v63  ;;  %v1361_v19 = vpop.f32.mrf.mxu0  ;;  %v7721_v14 = vld [vmem:[#allocation29_spill] sm:$0xff] }
 0x10c   : > { %v907_v17 = vpop.f32.mrf.mxu1 }
 0x10d   : > { %v6945_v22 = vadd.f32 %v5468_v7, %v1043_v59  ;;  %v1042_v40 = vadd.f32 %v907_v17, %v6820_v26  ;;  %v5471_v43 = vpop.f32.mrf.mxu0  ;;  %5770 = vmatmul.mubr.msk.f32.gmra.mxu0 %vm256_vm1, %v7685_v25  ;;  %v7723_v7 = vld [vmem:[#allocation8_spill] sm:$0xff] }
 0x10e   : > { %v5421_v61 = vpop.f32.mrf.mxu1  ;;  %5720 = vmatmul.mubr.msk.f32.gmra.mxu1 %vm256_vm1, %v6341_v1  ;;  %5772 = vmatprep.mubr.msk.f32.mxu0 %vm256_vm1, %v7686_v27 }
 0x10f   : > { %v6952_v50 = vadd.f32 %v1361_v19, %v1042_v40  ;;  %v1045_v63 = vadd.f32 %v5421_v61, %v6824_v58  ;;  %5722 = vmatprep.mubr.msk.f32.mxu1 %vm256_vm1, %v6347_v3  ;;  %v1371_v23 = vpop.f32.mrf.mxu0  ;;  %v7724_v19 = vld [vmem:[#allocation31_spill] sm:$0xff]  ;;  %v7725_v40 = vld [vmem:[#allocation32_spill] sm:$0xff] }
 0x110   : > { %v917_v21 = vpop.f32.mrf.mxu1 }
 0x111   : > { %v6959_v26 = vadd.f32 %v5471_v43, %v1045_v63  ;;  %v1044_v41 = vadd.f32 %v917_v21, %v6836_v30  ;;  %v5474_v47 = vpop.f32.mrf.mxu0  ;;  %5773 = vmatmul.mubr.msk.f32.gmra.mxu0 %vm256_vm1, %v7687_v29  ;;  %v7726_v43 = vld [vmem:[#allocation9_spill] sm:$0xff] }
 0x112   : > { %v5424_v1 = vpop.f32.mrf.mxu1  ;;  %5723 = vmatmul.mubr.msk.f32.gmra.mxu1 %vm256_vm1, %v6361_v9  ;;  %5775 = vmatprep.mubr.msk.f32.mxu0 %vm256_vm1, %v7688_v31  ;;  %v7727_v21 = vld [vmem:[#allocation33_spill] sm:$0xff] }
 0x113   : > { %v6966_v58 = vadd.f32 %v1371_v23, %v1044_v41  ;;  %v1047_v3 = vadd.f32 %v5424_v1, %v6840_v24  ;;  %5725 = vmatprep.mubr.msk.f32.mxu1 %vm256_vm1, %v6367_v37  ;;  %v1381_v27 = vpop.f32.mrf.mxu0  ;;  %v7728_v23 = vld [vmem:[#allocation34_spill] sm:$0xff] }
 0x114   : > { %v927_v25 = vpop.f32.mrf.mxu1 }
 0x115   : > { %v6973_v30 = vadd.f32 %v5474_v47, %v1047_v3  ;;  %v1046_v46 = vadd.f32 %v927_v25, %v6852_v34  ;;  %v5477_v51 = vpop.f32.mrf.mxu0  ;;  %5776 = vmatmul.mubr.msk.f32.gmra.mxu0 %vm256_vm1, %v7689_v33  ;;  %v7729_v3 = vld [vmem:[#allocation10_spill] sm:$0xff] }
 0x116   : > { %v5427_v9 = vpop.f32.mrf.mxu1  ;;  %5726 = vmatmul.mubr.msk.f32.gmra.mxu1 %vm256_vm1, %v6381_v39  ;;  %5778 = vmatprep.mubr.msk.f32.mxu0 %vm256_vm1, %v7690_v35 }
 0x117   : > { %v6980_v29 = vadd.f32 %v1381_v27, %v1046_v46  ;;  %v1049_v37 = vadd.f32 %v5427_v9, %v6860_v44  ;;  %5728 = vmatprep.mubr.msk.f32.mxu1 %vm256_vm1, %v6387_v5  ;;  %v1391_v24 = vpop.f32.mrf.mxu0  ;;  %v7730_v9 = vld [vmem:[#allocation35_spill] sm:$0xff] }
 0x118   : > { %v937_v31 = vpop.f32.mrf.mxu1 }
 0x119   : > { %v6987_v34 = vadd.f32 %v5477_v51, %v1049_v37  ;;  %v1048_v42 = vadd.f32 %v937_v31, %v6875_v32  ;;  %v5480_v13 = vpop.f32.mrf.mxu0  ;;  %5779 = vmatmul.mubr.msk.f32.gmra.mxu0 %vm256_vm1, %v7691_v10  ;;  %v7731_v51 = vld [vmem:[#allocation36_spill] sm:$0xff]  ;;  %v7732_v31 = vld [vmem:[#allocation11_spill] sm:$0xff] }
 0x11a   : > { %v5430_v39 = vpop.f32.mrf.mxu1  ;;  %5729 = vmatmul.mubr.msk.f32.gmra.mxu1 %vm256_vm1, %v6401_v38  ;;  %5781 = vmatprep.mubr.msk.f32.mxu0 %vm256_vm1, %v7692_v8 }
 0x11b   : > { %v6994_v44 = vadd.f32 %v1391_v24, %v1048_v42  ;;  %v1051_v5 = vadd.f32 %v5430_v39, %v6879_v52  ;;  %5731 = vmatprep.mubr.msk.f32.mxu1 %vm256_vm1, %v6407_v0  ;;  %v1401_v35 = vpop.f32.mrf.mxu0  ;;  %v7733_v42 = vld [vmem:[#allocation37_spill] sm:$0xff]  ;;  %v7734_v39 = vld [vmem:[#allocation38_spill] sm:$0xff] }
 0x11c   : > { %v947_v33 = vpop.f32.mrf.mxu1 }
 0x11d   : > { %v7001_v32 = vadd.f32 %v5480_v13, %v1051_v5  ;;  %v1050_v12 = vadd.f32 %v947_v33, %v6890_v56  ;;  %v5483_v53 = vpop.f32.mrf.mxu0  ;;  %5782 = vmatmul.mubr.msk.f32.gmra.mxu0 %vm256_vm1, %v7694_v11  ;;  %v7719_v11 = vld [vmem:[#allocation28_spill] sm:$0xff]  ;;  %v4948_v33 = vld [vmem:[%s6032_s5 + $0x169] sm:$0xff] }
 0x11e   : > { %v5433_v38 = vpop.f32.mrf.mxu1  ;;  %5732 = vmatmul.mubr.msk.f32.gmra.mxu1 %vm256_vm1, %v6421_v2  ;;  %5784 = vmatprep.mubr.msk.f32.mxu0 %vm256_vm1, %v7695_v16  ;;  %v7722_v16 = vld [vmem:[#allocation30_spill] sm:$0xff] }
 0x11f   : > { %v7008_v52 = vadd.f32 %v1401_v35, %v1050_v12  ;;  %v1053_v0 = vadd.f32 %v5433_v38, %v6762_v6  ;;  %5734 = vmatprep.mubr.msk.f32.mxu1 %vm256_vm1, %v6427_v60  ;;  %v1411_v8 = vpop.f32.mrf.mxu0  ;;  %v7720_v60 = vld [vmem:[#allocation7_spill] sm:$0xff]  ;;  %v7735_v38 = vld [vmem:[#allocation12_spill] sm:$0xff] }
 0x120   : > { %v957_v10 = vpop.f32.mrf.mxu1  ;;  %v5014_v35 = vld [vmem:[%s6032_s5 + $0x16a] sm:$0xff] }
 0x121   : > { %v7015_v56 = vadd.f32 %v5483_v53, %v1053_v0  ;;  %v1052_v20 = vadd.f32 %v957_v10, %v6774_v45  ;;  %v5486_v55 = vpop.f32.mrf.mxu0  ;;  %5785 = vmatmul.mubr.msk.f32.gmra.mxu0 %vm256_vm1, %v7719_v11 }
 0x122   : > { %v5436_v2 = vpop.f32.mrf.mxu1  ;;  %5735 = vmatmul.mubr.msk.f32.gmra.mxu1 %vm256_vm1, %v6441_v62  ;;  %5787 = vmatprep.mubr.msk.f32.mxu0 %vm256_vm1, %v7722_v16 }
 0x123   : > { %v7022_v6 = vadd.f32 %v1411_v8, %v1052_v20  ;;  %v1055_v36 = vadd.f32 %v5436_v2, %v7720_v60  ;;  %5737 = vmatprep.mubr.msk.f32.mxu1 %vm256_vm1, %v7721_v14  ;;  %v1421_v45 = vpop.f32.mrf.mxu0  ;;  %v7736_v8 = vld [vmem:[#allocation39_spill] sm:$0xff]  ;;  %v7737_v20 = vld [vmem:[#allocation40_spill] sm:$0xff] }
 0x124   : > { %v967_v28 = vpop.f32.mrf.mxu1  ;;  %v4949_v60 = vld [vmem:[%s6032_s5 + $0x171] sm:$0xff] }
 0x125   : > { %v7029_v57 = vadd.f32 %v5486_v55, %v1055_v36  ;;  %v1054_v59 = vadd.f32 %v967_v28, %v7723_v7  ;;  %v5489_v17 = vpop.f32.mrf.mxu0  ;;  %5788 = vmatmul.mubr.msk.f32.gmra.mxu0 %vm256_vm1, %v7725_v40  ;;  %v7738_v55 = vld [vmem:[#allocation13_spill] sm:$0xff]  ;;  %v5015_v36 = vld [vmem:[%s6032_s5 + $0x172] sm:$0xff] }
 0x126   : > { %v5439_v62 = vpop.f32.mrf.mxu1  ;;  %5738 = vmatmul.mubr.msk.f32.gmra.mxu1 %vm256_vm1, %v7724_v19  ;;  %5790 = vmatprep.mubr.msk.f32.mxu0 %vm256_vm1, %v7728_v23  ;;  %v7740_v19 = vld [vmem:[#allocation15_spill] sm:$0xff] }
 0x127   : > { %v7036_v61 = vadd.f32 %v1421_v45, %v1054_v59  ;;  %v1057_v63 = vadd.f32 %v5439_v62, %v7726_v43  ;;  %5740 = vmatprep.mubr.msk.f32.mxu1 %vm256_vm1, %v7727_v21  ;;  %v1431_v1 = vpop.f32.mrf.mxu0  ;;  %v7739_v45 = vld [vmem:[#allocation14_spill] sm:$0xff]  ;;  %v7741_v43 = vld [vmem:[#allocation43_spill] sm:$0xff] }
 0x128   : > { %v977_v41 = vpop.f32.mrf.mxu1 }
 0x129   : > { %v7043_v47 = vadd.f32 %v5489_v17, %v1057_v63  ;;  %v1056_v25 = vadd.f32 %v977_v41, %v7729_v3  ;;  %v5492_v46 = vpop.f32.mrf.mxu0  ;;  %5791 = vmatmul.mubr.msk.f32.gmra.mxu0 %vm256_vm1, %v7731_v51  ;;  %v7742_v63 = vld [vmem:[#allocation17_spill] sm:$0xff]  ;;  %v7744_v51 = vld [vmem:[#allocation6_spill] sm:$0xff] }
 0x12a   : > { %v5442_v27 = vpop.f32.mrf.mxu1  ;;  %5741 = vmatmul.mubr.msk.f32.gmra.mxu1 %vm256_vm1, %v7730_v9  ;;  %5793 = vmatprep.mubr.msk.f32.mxu0 %vm256_vm1, %v7734_v39  ;;  %v4952_v41 = vld [vmem:[%s6032_s5 + $0x199] sm:$0xff] }
 0x12b   : > { %v7050_v37 = vadd.f32 %v1431_v1, %v1056_v25  ;;  %v1059_v24 = vadd.f32 %v5442_v27, %v7732_v31  ;;  %5743 = vmatprep.mubr.msk.f32.mxu1 %vm256_vm1, %v7733_v42  ;;  %v1441_v5 = vpop.f32.mrf.mxu0  ;;  %v5018_v1 = vld [vmem:[%s6032_s5 + $0x19a] sm:$0xff]  ;;  %v7745_v31 = vld [vmem:[#allocation19_spill] sm:$0xff]  ;;  %v7746_v42 = vld [vmem:[#allocation18_spill] sm:$0xff] }
 0x12c   : > { %v987_v13 = vpop.f32.mrf.mxu1  ;;  %v7743_v25 = vld [vmem:[#allocation16_spill] sm:$0xff] }
 0x12d   : > { %v7059_v12 = vadd.f32 %v5492_v46, %v1059_v24  ;;  %v1058_v53 = vadd.f32 %v987_v13, %v7735_v38  ;;  %v5495_v10 = vpop.f32.mrf.mxu0  ;;  %5794 = vmatmul.mubr.msk.f32.gmra.mxu0 %vm256_vm1, %v7737_v20  ;;  %v4953_v13 = vld [vmem:[%s6032_s5 + $0x1a1] sm:$0xff] }
 0x12e   : > { %v5445_v0 = vpop.f32.mrf.mxu1  ;;  %5744 = vmatmul.mubr.msk.f32.gmra.mxu1 %vm256_vm1, %v7736_v8  ;;  %5796 = vmatprep.mubr.msk.f32.mxu0 %vm256_vm1, %v5014_v35 }
 0x12f   : > { %v7066_v2 = vadd.f32 %v1441_v5, %v1058_v53  ;;  %v1061_v11 = vadd.f32 %v5445_v0, %v7738_v55  ;;  %5746 = vmatprep.mubr.msk.f32.mxu1 %vm256_vm1, %v4948_v33  ;;  %v1451_v16 = vpop.f32.mrf.mxu0  ;;  %v5019_v5 = vld [vmem:[%s6032_s5 + $0x1a2] sm:$0xff]  ;;  %v7747_v53 = vld [vmem:[#allocation20_spill] sm:$0xff] }
 0x130   : > { %v997_v14 = vpop.f32.mrf.mxu1  ;;  %v7748_v55 = vld [vmem:[#allocation21_spill] sm:$0xff] }
 0x131   : > { %v7073_v28 = vadd.f32 %v5495_v10, %v1061_v11  ;;  %v1060_v7 = vadd.f32 %v997_v14, %v7739_v45  ;;  %v5498_v62 = vpop.f32.mrf.mxu0  ;;  %5797 = vmatmul.mubr.msk.f32.gmra.mxu0 %vm256_vm1, %v5015_v36 }
 0x132   : > { %v5448_v59 = vpop.f32.mrf.mxu1  ;;  %5747 = vmatmul.mubr.msk.f32.gmra.mxu1 %vm256_vm1, %v4949_v60  ;;  %5799 = vmatprep.mubr.msk.f32.mxu0 %vm256_vm1, %v7742_v63 }
 0x133   : > { %v7078_v17 = vadd.f32 %v1451_v16, %v1060_v7  ;;  %v1063_v40 = vadd.f32 %v5448_v59, %v7740_v19  ;;  %5749 = vmatprep.mubr.msk.f32.mxu1 %vm256_vm1, %v7741_v43  ;;  %v1461_v23 = vpop.f32.mrf.mxu0  ;;  %v7749_v16 = vld [vmem:[#allocation22_spill] sm:$0xff] }
 0x134   : > { %v1007_v21 = vpop.f32.mrf.mxu1 }
 0x135   : > { %v7087_v3 = vadd.f32 %v5498_v62, %v1063_v40  ;;  %v1062_v27 = vadd.f32 %v1007_v21, %v7743_v25  ;;  %v5501_v9 = vpop.f32.mrf.mxu0  ;;  %5800 = vmatmul.mubr.msk.f32.gmra.mxu0 %vm256_vm1, %v7745_v31 }
 0x136   : > { %v5451_v46 = vpop.f32.mrf.mxu1  ;;  %5750 = vmatmul.mubr.msk.f32.gmra.mxu1 %vm256_vm1, %v7744_v51  ;;  %5802 = vmatprep.mubr.msk.f32.mxu0 %vm256_vm1, %v5018_v1 }
 0x137   : > { %v7094_v24 = vadd.f32 %v1461_v23, %v1062_v27  ;;  %v1065_v39 = vadd.f32 %v5451_v46, %v7746_v42  ;;  %5752 = vmatprep.mubr.msk.f32.mxu1 %vm256_vm1, %v4952_v41  ;;  %v1471_v35 = vpop.f32.mrf.mxu0 }
 0x138   : > { %v1017_v33 = vpop.f32.mrf.mxu1 }
 0x139   : > { %v7101_v38 = vadd.f32 %v5501_v9, %v1065_v39  ;;  %v1064_v0 = vadd.f32 %v1017_v33, %v7747_v53  ;;  %v5504_v8 = vpop.f32.mrf.mxu0  ;;  %5803 = vmatmul.mubr.msk.f32.gmra.mxu0 %vm256_vm1, %v5019_v5 }
 0x13a   : > { %v5454_v10 = vpop.f32.mrf.mxu1  ;;  %5753 = vmatmul.mubr.msk.f32.gmra.mxu1 %vm256_vm1, %v4953_v13 }
 0x13b   : > { %v7106_v20 = vadd.f32 %v1471_v35, %v1064_v0  ;;  %v1067_v11 = vadd.f32 %v5454_v10, %v7748_v55  ;;  %v1481_v36 = vpop.f32.mrf.mxu0 }
 0x13c   : > { %v1027_v60 = vpop.f32.mrf.mxu1 }
 0x13d   : > { %v7109_v14 = vadd.f32 %v5504_v8, %v1067_v11  ;;  %v1066_v45 = vadd.f32 %v1027_v60, %v7749_v16  ;;  %v5559_v59 = vpop.f32.mrf.mxu0 }
 0x13e   : > { %v5509_v7 = vpop.f32.mrf.mxu1 }
 0x13f   : > { %v7112_v62 = vadd.f32 %v1481_v36, %v1066_v45  ;;  %v1948_v19 = vadd.f32 %v5509_v7, %v6903_v54  ;;  %v2242_v43 = vpop.f32.mrf.mxu0 }
 0x140   : > { %v1788_v40 = vpop.f32.mrf.mxu1 }
 0x141   : > { %v7115_v63 = vadd.f32 %v5559_v59, %v1948_v19  ;;  %v1947_v21 = vadd.f32 %v1788_v40, %v6910_v49  ;;  %v5562_v41 = vpop.f32.mrf.mxu0 }
 0x142   : > { %v5512_v23 = vpop.f32.mrf.mxu1 }
 0x143   : > { %v7118_v1 = vadd.f32 %v2242_v43, %v1947_v21  ;;  %v1950_v25 = vadd.f32 %v5512_v23, %v6917_v4  ;;  %v2252_v46 = vpop.f32.mrf.mxu0 }
 0x144   : > { %v1798_v27 = vpop.f32.mrf.mxu1 }
 0x145   : > { %v7121_v9 = vadd.f32 %v5562_v41, %v1950_v25  ;;  %v1949_v51 = vadd.f32 %v1798_v27, %v6924_v15  ;;  %v5565_v54 = vpop.f32.mrf.mxu0 }
 0x146   : > { %v5515_v31 = vpop.f32.mrf.mxu1 }
 0x147   : > { %v7124_v42 = vadd.f32 %v2252_v46, %v1949_v51  ;;  %v1952_v39 = vadd.f32 %v5515_v31, %v6931_v18  ;;  %v2262_v49 = vpop.f32.mrf.mxu0 }
 0x148   : > { %v1808_v13 = vpop.f32.mrf.mxu1 }
 0x149   : > { %v7127_v5 = vadd.f32 %v5565_v54, %v1952_v39  ;;  %v1951_v33 = vadd.f32 %v1808_v13, %v6938_v48  ;;  %v5568_v4 = vpop.f32.mrf.mxu0 }
 0x14a   : > { %v5518_v35 = vpop.f32.mrf.mxu1 }
 0x14b   : > { %v7130_v53 = vadd.f32 %v2262_v49, %v1951_v33  ;;  %v1954_v0 = vadd.f32 %v5518_v35, %v6945_v22  ;;  %v2272_v15 = vpop.f32.mrf.mxu0 }
 0x14c   : > { %v1818_v10 = vpop.f32.mrf.mxu1 }
 0x14d   : > { %v7133_v8 = vadd.f32 %v5568_v4, %v1954_v0  ;;  %v1953_v55 = vadd.f32 %v1818_v10, %v6952_v50  ;;  %v5571_v18 = vpop.f32.mrf.mxu0 }
 0x14e   : > { %v5521_v11 = vpop.f32.mrf.mxu1 }
 0x14f   : > { %v7136_v60 = vadd.f32 %v2272_v15, %v1953_v55  ;;  %v1956_v36 = vadd.f32 %v5521_v11, %v6959_v26  ;;  %v2282_v48 = vpop.f32.mrf.mxu0 }
 0x150   : > { %v1828_v16 = vpop.f32.mrf.mxu1 }
 0x151   : > { %v7139_v45 = vadd.f32 %v5571_v18, %v1956_v36  ;;  %v1955_v7 = vadd.f32 %v1828_v16, %v6966_v58  ;;  %v5574_v22 = vpop.f32.mrf.mxu0 }
 0x152   : > { %v5524_v59 = vpop.f32.mrf.mxu1 }
 0x153   : > { %v7142_v19 = vadd.f32 %v2282_v48, %v1955_v7  ;;  %v1958_v40 = vadd.f32 %v5524_v59, %v6973_v30  ;;  %v2292_v50 = vpop.f32.mrf.mxu0 }
 0x154   : > { %v1838_v43 = vpop.f32.mrf.mxu1 }
 0x155   : > { %v7145_v21 = vadd.f32 %v5574_v22, %v1958_v40  ;;  %v1957_v23 = vadd.f32 %v1838_v43, %v6980_v29  ;;  %v5577_v26 = vpop.f32.mrf.mxu0 }
 0x156   : > { %v5527_v41 = vpop.f32.mrf.mxu1 }
 0x157   : > { %v7148_v25 = vadd.f32 %v2292_v50, %v1957_v23  ;;  %v1960_v27 = vadd.f32 %v5527_v41, %v6987_v34  ;;  %v2302_v58 = vpop.f32.mrf.mxu0 }
 0x158   : > { %v1848_v46 = vpop.f32.mrf.mxu1 }
 0x159   : > { %v7151_v51 = vadd.f32 %v5577_v26, %v1960_v27  ;;  %v1959_v31 = vadd.f32 %v1848_v46, %v6994_v44  ;;  %v5580_v30 = vpop.f32.mrf.mxu0 }
 0x15a   : > { %v5530_v54 = vpop.f32.mrf.mxu1 }
 0x15b   : > { %v7154_v39 = vadd.f32 %v2302_v58, %v1959_v31  ;;  %v1962_v13 = vadd.f32 %v5530_v54, %v7001_v32  ;;  %v2312_v29 = vpop.f32.mrf.mxu0 }
 0x15c   : > { %v1858_v49 = vpop.f32.mrf.mxu1 }
 0x15d   : > { %v7157_v33 = vadd.f32 %v5580_v30, %v1962_v13  ;;  %v1961_v35 = vadd.f32 %v1858_v49, %v7008_v52  ;;  %v5583_v34 = vpop.f32.mrf.mxu0 }
 0x15e   : > { %v5533_v4 = vpop.f32.mrf.mxu1 }
 0x15f   : > { %v7160_v0 = vadd.f32 %v2312_v29, %v1961_v35  ;;  %v1964_v10 = vadd.f32 %v5533_v4, %v7015_v56  ;;  %v2322_v44 = vpop.f32.mrf.mxu0 }
 0x160   : > { %v1868_v15 = vpop.f32.mrf.mxu1 }
 0x161   : > { %v7163_v55 = vadd.f32 %v5583_v34, %v1964_v10  ;;  %v1963_v11 = vadd.f32 %v1868_v15, %v7022_v6  ;;  %v5586_v32 = vpop.f32.mrf.mxu0 }
 0x162   : > { %v5536_v18 = vpop.f32.mrf.mxu1 }
 0x163   : > { %v7166_v36 = vadd.f32 %v2322_v44, %v1963_v11  ;;  %v1966_v16 = vadd.f32 %v5536_v18, %v7029_v57  ;;  %v2332_v52 = vpop.f32.mrf.mxu0 }
 0x164   : > { %v1878_v48 = vpop.f32.mrf.mxu1 }
 0x165   : > { %v7169_v7 = vadd.f32 %v5586_v32, %v1966_v16  ;;  %v1965_v59 = vadd.f32 %v1878_v48, %v7036_v61  ;;  %v5589_v56 = vpop.f32.mrf.mxu0 }
 0x166   : > { %v5539_v22 = vpop.f32.mrf.mxu1 }
 0x167   : > { %v7172_v40 = vadd.f32 %v2332_v52, %v1965_v59  ;;  %v1968_v43 = vadd.f32 %v5539_v22, %v7043_v47  ;;  %v2342_v6 = vpop.f32.mrf.mxu0 }
 0x168   : > { %v1888_v50 = vpop.f32.mrf.mxu1 }
 0x169   : > { %v7175_v23 = vadd.f32 %v5589_v56, %v1968_v43  ;;  %v1967_v41 = vadd.f32 %v1888_v50, %v7050_v37  ;;  %v5592_v57 = vpop.f32.mrf.mxu0 }
 0x16a   : > { %v5542_v26 = vpop.f32.mrf.mxu1 }
 0x16b   : > { %v7178_v27 = vadd.f32 %v2342_v6, %v1967_v41  ;;  %v1970_v46 = vadd.f32 %v5542_v26, %v7059_v12  ;;  %v2352_v61 = vpop.f32.mrf.mxu0 }
 0x16c   : > { %v1898_v58 = vpop.f32.mrf.mxu1 }
 0x16d   : > { %v7181_v31 = vadd.f32 %v5592_v57, %v1970_v46  ;;  %v1969_v54 = vadd.f32 %v1898_v58, %v7066_v2  ;;  %v5595_v47 = vpop.f32.mrf.mxu0 }
 0x16e   : > { %v5545_v30 = vpop.f32.mrf.mxu1 }
 0x16f   : > { %v7184_v13 = vadd.f32 %v2352_v61, %v1969_v54  ;;  %v1972_v49 = vadd.f32 %v5545_v30, %v7073_v28  ;;  %v2362_v37 = vpop.f32.mrf.mxu0 }
 0x170   : > { %v1908_v29 = vpop.f32.mrf.mxu1 }
 0x171   : > { %v7187_v35 = vadd.f32 %v5595_v47, %v1972_v49  ;;  %v1971_v4 = vadd.f32 %v1908_v29, %v7078_v17  ;;  %v5598_v12 = vpop.f32.mrf.mxu0 }
 0x172   : > { %v5548_v34 = vpop.f32.mrf.mxu1 }
 0x173   : > { %v7190_v10 = vadd.f32 %v2362_v37, %v1971_v4  ;;  %v1974_v15 = vadd.f32 %v5548_v34, %v7087_v3  ;;  %v2372_v2 = vpop.f32.mrf.mxu0 }
 0x174   : > { %v1918_v44 = vpop.f32.mrf.mxu1 }
 0x175   : > { %7750 = vst [vmem:[#allocation23_spill] sm:$0xff] %v7190_v10  ;;  %v7193_v11 = vadd.f32 %v5598_v12, %v1974_v15  ;;  %v1973_v18 = vadd.f32 %v1918_v44, %v7094_v24  ;;  %v5601_v28 = vpop.f32.mrf.mxu0 }
 0x176   : > { %v5551_v32 = vpop.f32.mrf.mxu1 }
 0x177   : > { %v7196_v16 = vadd.f32 %v2372_v2, %v1973_v18  ;;  %v1976_v48 = vadd.f32 %v5551_v32, %v7101_v38  ;;  %v2382_v17 = vpop.f32.mrf.mxu0 }
 0x178   : > { %v1928_v52 = vpop.f32.mrf.mxu1 }
 0x179   : > { %7751 = vst [vmem:[#allocation24_spill] sm:$0xff] %v7196_v16  ;;  %v7199_v59 = vadd.f32 %v5601_v28, %v1976_v48  ;;  %v1975_v22 = vadd.f32 %v1928_v52, %v7106_v20  ;;  %v5604_v3 = vpop.f32.mrf.mxu0 }
 0x17a   : > { %v5554_v56 = vpop.f32.mrf.mxu1 }
 0x17b   : > { %v7202_v43 = vadd.f32 %v2382_v17, %v1975_v22  ;;  %v1978_v50 = vadd.f32 %v5554_v56, %v7109_v14  ;;  %v2392_v24 = vpop.f32.mrf.mxu0 }
 0x17c   : > { %v1938_v6 = vpop.f32.mrf.mxu1 }
 0x17d   : > { %7752 = vst [vmem:[#allocation25_spill] sm:$0xff] %v7202_v43  ;;  %v7205_v41 = vadd.f32 %v5604_v3, %v1978_v50  ;;  %v1977_v26 = vadd.f32 %v1938_v6, %v7112_v62  ;;  %v5659_v38 = vpop.f32.mrf.mxu0 }
 0x17e   : > { %v5609_v57 = vpop.f32.mrf.mxu1 }
 0x17f   : > { %v7208_v46 = vadd.f32 %v2392_v24, %v1977_v26  ;;  %v2856_v58 = vadd.f32 %v5609_v57, %v7115_v63  ;;  %v7213_v20 = vpop.f32.mrf.mxu0 }
 0x180   : > { %v7211_v61 = vpop.f32.mrf.mxu1 }
 0x181   : > { %7753 = vst [vmem:[#allocation26_spill] sm:$0xff] %v7208_v46  ;;  %v7215_v54 = vadd.f32 %v5659_v38, %v2856_v58  ;;  %v5662_v14 = vpop.f32.mrf.mxu0 }
 0x182   : > { %v5612_v30 = vpop.f32.mrf.mxu1 }
 0x183   : > { %v2858_v47 = vadd.f32 %v5612_v30, %v7121_v9  ;;  %v7220_v29 = vpop.f32.mrf.mxu0 }
 0x184   : > { %v7218_v49 = vpop.f32.mrf.mxu1 }
 0x185   : > { %v7222_v62 = vadd.f32 %v5662_v14, %v2858_v47  ;;  %v5665_v4 = vpop.f32.mrf.mxu0 }
 0x186   : > { %v5615_v37 = vpop.f32.mrf.mxu1 }
 0x187   : > { %v2860_v63 = vadd.f32 %v5615_v37, %v7127_v5  ;;  %v7227_v12 = vpop.f32.mrf.mxu0 }
 0x188   : > { %v7225_v34 = vpop.f32.mrf.mxu1 }
 0x189   : > { %v7229_v15 = vadd.f32 %v5665_v4, %v2860_v63  ;;  %v5668_v2 = vpop.f32.mrf.mxu0 }
 0x18a   : > { %v5618_v44 = vpop.f32.mrf.mxu1 }
 0x18b   : > { %v2862_v9 = vadd.f32 %v5618_v44, %v7133_v8  ;;  %v7234_v32 = vpop.f32.mrf.mxu0 }
 0x18c   : > { %v7232_v18 = vpop.f32.mrf.mxu1 }
 0x18d   : > { %v7236_v28 = vadd.f32 %v5668_v2, %v2862_v9  ;;  %v5671_v52 = vpop.f32.mrf.mxu0 }
 0x18e   : > { %v5621_v48 = vpop.f32.mrf.mxu1 }
 0x18f   : > { %v2864_v5 = vadd.f32 %v5621_v48, %v7139_v45  ;;  %v7241_v22 = vpop.f32.mrf.mxu0 }
 0x190   : > { %v7239_v17 = vpop.f32.mrf.mxu1 }
 0x191   : > { %v7243_v56 = vadd.f32 %v5671_v52, %v2864_v5  ;;  %v5674_v50 = vpop.f32.mrf.mxu0 }
 0x192   : > { %v5624_v3 = vpop.f32.mrf.mxu1 }
 0x193   : > { %v2866_v8 = vadd.f32 %v5624_v3, %v7145_v21  ;;  %v7248_v24 = vpop.f32.mrf.mxu0 }
 0x194   : > { %v7246_v6 = vpop.f32.mrf.mxu1 }
 0x195   : > { %v7250_v26 = vadd.f32 %v5674_v50, %v2866_v8  ;;  %v5677_v38 = vpop.f32.mrf.mxu0 }
 0x196   : > { %v5627_v57 = vpop.f32.mrf.mxu1 }
 0x197   : > { %v2868_v45 = vadd.f32 %v5627_v57, %v7151_v51  ;;  %v7255_v30 = vpop.f32.mrf.mxu0 }
 0x198   : > { %v7253_v58 = vpop.f32.mrf.mxu1 }
 0x199   : > { %v7257_v14 = vadd.f32 %v5677_v38, %v2868_v45  ;;  %v5680_v37 = vpop.f32.mrf.mxu0 }
 0x19a   : > { %v5630_v47 = vpop.f32.mrf.mxu1 }
 0x19b   : > { %v2870_v21 = vadd.f32 %v5630_v47, %v7157_v33  ;;  %v7262_v63 = vpop.f32.mrf.mxu0 }
 0x19c   : > { %v7260_v4 = vpop.f32.mrf.mxu1 }
 0x19d   : > { %v7264_v44 = vadd.f32 %v5680_v37, %v2870_v21  ;;  %v5683_v9 = vpop.f32.mrf.mxu0 }
 0x19e   : > { %v5633_v2 = vpop.f32.mrf.mxu1 }
 0x19f   : > { %v2872_v51 = vadd.f32 %v5633_v2, %v7163_v55  ;;  %v7269_v52 = vpop.f32.mrf.mxu0 }
 0x1a0   : > { %v7267_v48 = vpop.f32.mrf.mxu1 }
 0x1a1   : > { %v7271_v5 = vadd.f32 %v5683_v9, %v2872_v51  ;;  %v5686_v50 = vpop.f32.mrf.mxu0 }
 0x1a2   : > { %v5636_v3 = vpop.f32.mrf.mxu1 }
 0x1a3   : > { %v2874_v33 = vadd.f32 %v5636_v3, %v7169_v7  ;;  %v7276_v57 = vpop.f32.mrf.mxu0 }
 0x1a4   : > { %v7274_v8 = vpop.f32.mrf.mxu1 }
 0x1a5   : > { %v7278_v38 = vadd.f32 %v5686_v50, %v2874_v33  ;;  %v5689_v47 = vpop.f32.mrf.mxu0 }
 0x1a6   : > { %v5639_v45 = vpop.f32.mrf.mxu1 }
 0x1a7   : > { %v2876_v55 = vadd.f32 %v5639_v45, %v7175_v23  ;;  %v7283_v21 = vpop.f32.mrf.mxu0 }
 0x1a8   : > { %v7281_v37 = vpop.f32.mrf.mxu1 }
 0x1a9   : > { %v7285_v2 = vadd.f32 %v5689_v47, %v2876_v55  ;;  %v5692_v51 = vpop.f32.mrf.mxu0 }
 0x1aa   : > { %v5642_v9 = vpop.f32.mrf.mxu1 }
 0x1ab   : > { %7754 = vst [vmem:[#allocation27_spill] sm:$0xff] %v7285_v2  ;;  %v2878_v7 = vadd.f32 %v5642_v9, %v7181_v31  ;;  %v7290_v46 = vpop.f32.mrf.mxu0 }
 0x1ac   : > { %v7288_v3 = vpop.f32.mrf.mxu1 }
 0x1ad   : > { %v7292_v50 = vadd.f32 %v5692_v51, %v2878_v7  ;;  %v5695_v43 = vpop.f32.mrf.mxu0 }
 0x1ae   : > { %v5645_v33 = vpop.f32.mrf.mxu1 }
 0x1af   : > { %7755 = vst [vmem:[#allocation41_spill] sm:$0xff] %v7292_v50  ;;  %v2880_v23 = vadd.f32 %v5645_v33, %v7187_v35  ;;  %v7297_v16 = vpop.f32.mrf.mxu0 }
 0x1b0   : > { %v7295_v45 = vpop.f32.mrf.mxu1 }
 0x1b1   : > { %7756 = vst [vmem:[#allocation42_spill] sm:$0xff] %v7295_v45  ;;  %v7299_v47 = vadd.f32 %v5695_v43, %v2880_v23  ;;  %v5698_v10 = vpop.f32.mrf.mxu0 }
 0x1b2   : > { %v5648_v55 = vpop.f32.mrf.mxu1 }
 0x1b3   : > { %7757 = vst [vmem:[#allocation28_spill] sm:$0xff] %v7299_v47  ;;  %v2882_v31 = vadd.f32 %v5648_v55, %v7193_v11  ;;  %v7304_v2 = vpop.f32.mrf.mxu0  ;;  %v2855_v11 = vadd.f32 %v7211_v61, %v7118_v1 }
 0x1b4   : > { %v7302_v9 = vpop.f32.mrf.mxu1  ;;  %7758 = vst [vmem:[#allocation7_spill] sm:$0xff] %v7304_v2 }
 0x1b5   : > { %v7306_v51 = vadd.f32 %v5698_v10, %v2882_v31  ;;  %v5701_v50 = vpop.f32.mrf.mxu0 }
 0x1b6   : > { %v5651_v7 = vpop.f32.mrf.mxu1 }
 0x1b7   : > { %7759 = vst [vmem:[#allocation29_spill] sm:$0xff] %v7306_v51  ;;  %v2884_v35 = vadd.f32 %v5651_v7, %v7199_v59  ;;  %v7311_v45 = vpop.f32.mrf.mxu0  ;;  %v3312_v51 = vadd.f32 %v7213_v20, %v2855_v11 }
 0x1b8   : > { %v7309_v33 = vpop.f32.mrf.mxu1  ;;  %7760 = vst [vmem:[#allocation30_spill] sm:$0xff] %v7311_v45 }
 0x1b9   : > { %v7313_v43 = vadd.f32 %v5701_v50, %v2884_v35  ;;  %v5704_v47 = vpop.f32.mrf.mxu0  ;;  %v2857_v50 = vadd.f32 %v7218_v49, %v7124_v42 }
 0x1ba   : > { %v5654_v23 = vpop.f32.mrf.mxu1 }
 0x1bb   : > { %7761 = vst [vmem:[#allocation8_spill] sm:$0xff] %v7313_v43  ;;  %v2886_v55 = vadd.f32 %v5654_v23, %v7205_v41  ;;  %v7320_v10 = vpop.f32.mrf.mxu0  ;;  %v3314_v23 = vadd.f32 %v7220_v29, %v2857_v50 }
 0x1bc   : > { %v7318_v2 = vpop.f32.mrf.mxu1  ;;  %7763 = vst [vmem:[#allocation32_spill] sm:$0xff] %v7320_v10 }
 0x1bd   : > { %7762 = vst [vmem:[#allocation31_spill] sm:$0xff] %v7318_v2  ;;  %v7322_v31 = vadd.f32 %v5704_v47, %v2886_v55  ;;  %v5759_v7 = vpop.f32.mrf.mxu0  ;;  %v2859_v47 = vadd.f32 %v7225_v34, %v7130_v53 }
 0x1be   : > { %v5709_v59 = vpop.f32.mrf.mxu1 }
 0x1bf   : > { %7764 = vst [vmem:[#allocation9_spill] sm:$0xff] %v7322_v31  ;;  %v4061_v43 = vpop.f32.mrf.mxu0  ;;  %v3767_v45 = vadd.f32 %v5709_v59, %v7215_v54  ;;  %v3316_v54 = vadd.f32 %v7227_v12, %v2859_v47 }
 0x1c0   : > { %v3607_v35 = vpop.f32.mrf.mxu1 }
 0x1c1   : > { %v3766_v1 = vadd.f32 %v3607_v35, %v3312_v51  ;;  %v5762_v41 = vpop.f32.mrf.mxu0  ;;  %v7333_v20 = vadd.f32 %v5759_v7, %v3767_v45  ;;  %v2861_v51 = vadd.f32 %v7232_v18, %v7136_v60  ;;  %v2863_v60 = vadd.f32 %v7239_v17, %v7142_v19 }
 0x1c2   : > { %v5712_v61 = vpop.f32.mrf.mxu1  ;;  %v2865_v19 = vadd.f32 %v7246_v6, %v7148_v25  ;;  %v2867_v25 = vadd.f32 %v7253_v58, %v7154_v39  ;;  %v2869_v39 = vadd.f32 %v7260_v4, %v7160_v0  ;;  %v2871_v0 = vadd.f32 %v7267_v48, %v7166_v36 }
 0x1c3   : > { %v7331_v55 = vadd.f32 %v4061_v43, %v3766_v1  ;;  %v4071_v10 = vpop.f32.mrf.mxu0  ;;  %v3769_v42 = vadd.f32 %v5712_v61, %v7222_v62  ;;  %v3318_v12 = vadd.f32 %v7234_v32, %v2861_v51  ;;  %v3320_v32 = vadd.f32 %v7241_v22, %v2863_v60 }
 0x1c4   : > { %v3617_v31 = vpop.f32.mrf.mxu1  ;;  %v3322_v22 = vadd.f32 %v7248_v24, %v2865_v19  ;;  %v3324_v24 = vadd.f32 %v7255_v30, %v2867_v25  ;;  %v3326_v30 = vadd.f32 %v7262_v63, %v2869_v39  ;;  %v3328_v63 = vadd.f32 %v7269_v52, %v2871_v0 }
 0x1c5   : > { %v3768_v49 = vadd.f32 %v3617_v31, %v3314_v23  ;;  %v5765_v2 = vpop.f32.mrf.mxu0  ;;  %v4316_v29 = vadd.f32 %v7333_v20, %v7331_v55  ;;  %v7343_v59 = vadd.f32 %v5762_v41, %v3769_v42  ;;  %v2873_v36 = vadd.f32 %v7274_v8, %v7172_v40 }
 0x1c6   : > { %v5715_v11 = vpop.f32.mrf.mxu1  ;;  %v2875_v40 = vadd.f32 %v7281_v37, %v7178_v27  ;;  %v2877_v27 = vadd.f32 %v7288_v3, %v7184_v13 }
 0x1c7   : > { %v7341_v53 = vadd.f32 %v4071_v10, %v3768_v49  ;;  %v4081_v43 = vpop.f32.mrf.mxu0  ;;  %v3771_v62 = vadd.f32 %v5715_v11, %v7229_v15  ;;  %v3330_v52 = vadd.f32 %v7276_v57, %v2873_v36  ;;  %v7768_v36 = vld [vmem:[#allocation41_spill] sm:$0xff] }
 0x1c8   : > { %v3627_v34 = vpop.f32.mrf.mxu1  ;;  %v3332_v57 = vadd.f32 %v7283_v21, %v2875_v40  ;;  %v3334_v21 = vadd.f32 %v7290_v46, %v2877_v27 }
 0x1c9   : > { %v4317_v45 = vadd.f32 %v4316_v29, %v7341_v53  ;;  %v3770_v31 = vadd.f32 %v3627_v34, %v3316_v54  ;;  %v5768_v50 = vpop.f32.mrf.mxu0  ;;  %v7353_v61 = vadd.f32 %v5765_v2, %v3771_v62 }
 0x1ca   : > { %v5718_v7 = vpop.f32.mrf.mxu1 }
 0x1cb   : > { %v7350_v18 = vadd.f32 %v4081_v43, %v3770_v31  ;;  %v4318_v10 = vadd.f32 %v4317_v45, %v7343_v59  ;;  %v4091_v1 = vpop.f32.mrf.mxu0  ;;  %v3773_v15 = vadd.f32 %v5718_v7, %v7236_v28 }
 0x1cc   : > { %v3637_v35 = vpop.f32.mrf.mxu1 }
 0x1cd   : > { %v4319_v41 = vadd.f32 %v4318_v10, %v7350_v18  ;;  %v3772_v23 = vadd.f32 %v3637_v35, %v3318_v12  ;;  %v5771_v42 = vpop.f32.mrf.mxu0  ;;  %v7363_v2 = vadd.f32 %v5768_v50, %v3773_v15 }
 0x1ce   : > { %v5721_v47 = vpop.f32.mrf.mxu1 }
 0x1cf   : > { %v7360_v17 = vadd.f32 %v4091_v1, %v3772_v23  ;;  %v4320_v49 = vadd.f32 %v4319_v41, %v7353_v61  ;;  %v4101_v54 = vpop.f32.mrf.mxu0  ;;  %v3775_v28 = vadd.f32 %v5721_v47, %v7243_v56 }
 0x1d0   : > { %v3647_v11 = vpop.f32.mrf.mxu1 }
 0x1d1   : > { %v4321_v51 = vadd.f32 %v4320_v49, %v7360_v17  ;;  %v3774_v29 = vadd.f32 %v3647_v11, %v3320_v32  ;;  %v5774_v43 = vpop.f32.mrf.mxu0  ;;  %v7373_v7 = vadd.f32 %v5771_v42, %v3775_v28 }
 0x1d2   : > { %v5724_v34 = vpop.f32.mrf.mxu1 }
 0x1d3   : > { %v7370_v6 = vadd.f32 %v4101_v54, %v3774_v29  ;;  %v4322_v45 = vadd.f32 %v4321_v51, %v7363_v2  ;;  %v4111_v31 = vpop.f32.mrf.mxu0  ;;  %v3777_v56 = vadd.f32 %v5724_v34, %v7250_v26 }
 0x1d4   : > { %v3657_v62 = vpop.f32.mrf.mxu1 }
 0x1d5   : > { %v4323_v50 = vadd.f32 %v4322_v45, %v7370_v6  ;;  %v3776_v12 = vadd.f32 %v3657_v62, %v3322_v22  ;;  %v5777_v10 = vpop.f32.mrf.mxu0  ;;  %v7383_v15 = vadd.f32 %v5774_v43, %v3777_v56 }
 0x1d6   : > { %v5727_v60 = vpop.f32.mrf.mxu1 }
 0x1d7   : > { %v7380_v58 = vadd.f32 %v4111_v31, %v3776_v12  ;;  %v4324_v35 = vadd.f32 %v4323_v50, %v7373_v7  ;;  %v4121_v41 = vpop.f32.mrf.mxu0  ;;  %v3779_v26 = vadd.f32 %v5727_v60, %v7257_v14 }
 0x1d8   : > { %v3667_v1 = vpop.f32.mrf.mxu1 }
 0x1d9   : > { %v4325_v23 = vadd.f32 %v4324_v35, %v7380_v58  ;;  %v3778_v47 = vadd.f32 %v3667_v1, %v3324_v24  ;;  %v5780_v32 = vpop.f32.mrf.mxu0  ;;  %v7393_v54 = vadd.f32 %v5777_v10, %v3779_v26 }
 0x1da   : > { %v5730_v42 = vpop.f32.mrf.mxu1 }
 0x1db   : > { %v7390_v4 = vadd.f32 %v4121_v41, %v3778_v47  ;;  %v4326_v19 = vadd.f32 %v4325_v23, %v7383_v15  ;;  %v4131_v11 = vpop.f32.mrf.mxu0  ;;  %v3781_v14 = vadd.f32 %v5730_v42, %v7264_v44 }
 0x1dc   : > { %v3677_v49 = vpop.f32.mrf.mxu1 }
 0x1dd   : > { %v4327_v51 = vadd.f32 %v4326_v19, %v7390_v4  ;;  %v3780_v28 = vadd.f32 %v3677_v49, %v3326_v30  ;;  %v5783_v34 = vpop.f32.mrf.mxu0  ;;  %v7403_v45 = vadd.f32 %v5780_v32, %v3781_v14  ;;  %v7765_v30 = vld [vmem:[#allocation27_spill] sm:$0xff] }
 0x1de   : > { %v5733_v29 = vpop.f32.mrf.mxu1 }
 0x1df   : > { %v7400_v48 = vadd.f32 %v4131_v11, %v3780_v28  ;;  %v4328_v43 = vadd.f32 %v4327_v51, %v7393_v54  ;;  %v4141_v25 = vpop.f32.mrf.mxu0  ;;  %v3783_v44 = vadd.f32 %v5733_v29, %v7271_v5  ;;  %v7766_v11 = vld [vmem:[#allocation23_spill] sm:$0xff]  ;;  %v7767_v51 = vld [vmem:[#allocation42_spill] sm:$0xff] }
 0x1e0   : > { %v3687_v22 = vpop.f32.mrf.mxu1  ;;  %v2879_v13 = vadd.f32 %v7767_v51, %v7766_v11  ;;  %v7774_v11 = vld [vmem:[#allocation30_spill] sm:$0xff] }
 0x1e1   : > { %v4329_v62 = vadd.f32 %v4328_v43, %v7400_v48  ;;  %v3782_v31 = vadd.f32 %v3687_v22, %v3328_v63  ;;  %v5786_v56 = vpop.f32.mrf.mxu0  ;;  %v7413_v24 = vadd.f32 %v5783_v34, %v3783_v44  ;;  %v7769_v44 = vld [vmem:[#allocation24_spill] sm:$0xff] }
 0x1e2   : > { %v5736_v50 = vpop.f32.mrf.mxu1  ;;  %v3336_v46 = vadd.f32 %v7297_v16, %v2879_v13  ;;  %v7775_v13 = vld [vmem:[#allocation26_spill] sm:$0xff] }
 0x1e3   : > { %v7410_v8 = vadd.f32 %v4141_v25, %v3782_v31  ;;  %v4330_v12 = vadd.f32 %v4329_v62, %v7403_v45  ;;  %v4151_v10 = vpop.f32.mrf.mxu0  ;;  %v3785_v5 = vadd.f32 %v5736_v50, %v7278_v38  ;;  %v2881_v31 = vadd.f32 %v7302_v9, %v7769_v44 }
 0x1e4   : > { %v3697_v60 = vpop.f32.mrf.mxu1 }
 0x1e5   : > { %v4331_v39 = vadd.f32 %v4330_v12, %v7410_v8  ;;  %v3784_v35 = vadd.f32 %v3697_v60, %v3330_v52  ;;  %v5789_v41 = vpop.f32.mrf.mxu0  ;;  %v7423_v42 = vadd.f32 %v5786_v56, %v3785_v5 }
 0x1e6   : > { %v5739_v1 = vpop.f32.mrf.mxu1 }
 0x1e7   : > { %v7420_v37 = vadd.f32 %v4151_v10, %v3784_v35  ;;  %v4332_v23 = vadd.f32 %v4331_v39, %v7413_v24  ;;  %v4161_v47 = vpop.f32.mrf.mxu0  ;;  %v3787_v38 = vadd.f32 %v5739_v1, %v7765_v30  ;;  %v7770_v10 = vld [vmem:[#allocation28_spill] sm:$0xff] }
 0x1e8   : > { %v3707_v26 = vpop.f32.mrf.mxu1 }
 0x1e9   : > { %v4333_v32 = vadd.f32 %v4332_v23, %v7420_v37  ;;  %v3786_v0 = vadd.f32 %v3707_v26, %v3332_v57  ;;  %v5792_v49 = vpop.f32.mrf.mxu0  ;;  %v7433_v34 = vadd.f32 %v5789_v41, %v3787_v38  ;;  %v7771_v41 = vld [vmem:[#allocation7_spill] sm:$0xff]  ;;  %v7772_v57 = vld [vmem:[#allocation25_spill] sm:$0xff] }
 0x1ea   : > { %v5742_v19 = vpop.f32.mrf.mxu1  ;;  %v3338_v16 = vadd.f32 %v7771_v41, %v2881_v31  ;;  %v2883_v9 = vadd.f32 %v7309_v33, %v7772_v57  ;;  %v7773_v38 = vld [vmem:[#allocation29_spill] sm:$0xff] }
 0x1eb   : > { %v7430_v3 = vadd.f32 %v4161_v47, %v3786_v0  ;;  %v4334_v14 = vadd.f32 %v4333_v32, %v7423_v42  ;;  %v4171_v29 = vpop.f32.mrf.mxu0  ;;  %v3789_v43 = vadd.f32 %v5742_v19, %v7768_v36 }
 0x1ec   : > { %v3717_v28 = vpop.f32.mrf.mxu1  ;;  %v3340_v51 = vadd.f32 %v7774_v11, %v2883_v9 }
 0x1ed   : > { %v4335_v63 = vadd.f32 %v4334_v14, %v7430_v3  ;;  %v3788_v22 = vadd.f32 %v3717_v28, %v3334_v21  ;;  %v5795_v62 = vpop.f32.mrf.mxu0  ;;  %v7443_v12 = vadd.f32 %v5792_v49, %v3789_v43  ;;  %v7776_v14 = vld [vmem:[#allocation31_spill] sm:$0xff] }
 0x1ee   : > { %v5745_v25 = vpop.f32.mrf.mxu1  ;;  %v2885_v28 = vadd.f32 %v7776_v14, %v7775_v13 }
 0x1ef   : > { %v7440_v50 = vadd.f32 %v4171_v29, %v3788_v22  ;;  %v4336_v56 = vadd.f32 %v4335_v63, %v7433_v34  ;;  %v4181_v40 = vpop.f32.mrf.mxu0  ;;  %v3791_v39 = vadd.f32 %v5745_v25, %v7770_v10  ;;  %v7777_v25 = vld [vmem:[#allocation8_spill] sm:$0xff] }
 0x1f0   : > { %v3727_v52 = vpop.f32.mrf.mxu1 }
 0x1f1   : > { %v4337_v60 = vadd.f32 %v4336_v56, %v7440_v50  ;;  %v3790_v5 = vadd.f32 %v3727_v52, %v3336_v46  ;;  %v5798_v1 = vpop.f32.mrf.mxu0  ;;  %v4245_v32 = vadd.f32 %v5795_v62, %v3791_v39  ;;  %v7778_v56 = vld [vmem:[#allocation32_spill] sm:$0xff] }
 0x1f2   : > { %v5748_v35 = vpop.f32.mrf.mxu1  ;;  %v3342_v52 = vadd.f32 %v7778_v56, %v2885_v28 }
 0x1f3   : > { %v7450_v27 = vadd.f32 %v4181_v40, %v3790_v5  ;;  %v4338_v23 = vadd.f32 %v4337_v60, %v7443_v12  ;;  %v4191_v47 = vpop.f32.mrf.mxu0  ;;  %v3793_v0 = vadd.f32 %v5748_v35, %v7773_v38  ;;  %v7779_v35 = vld [vmem:[#allocation9_spill] sm:$0xff] }
 0x1f4   : > { %v3737_v26 = vpop.f32.mrf.mxu1 }
 0x1f5   : > { %v4339_v30 = vadd.f32 %v4338_v23, %v7450_v27  ;;  %v3792_v19 = vadd.f32 %v3737_v26, %v3338_v16  ;;  %v5801_v21 = vpop.f32.mrf.mxu0  ;;  %v4247_v43 = vadd.f32 %v5798_v1, %v3793_v0 }
 0x1f6   : > { %v5751_v49 = vpop.f32.mrf.mxu1 }
 0x1f7   : > { %v4246_v33 = vadd.f32 %v4191_v47, %v3792_v19  ;;  %v4340_v29 = vadd.f32 %v4339_v30, %v4245_v32  ;;  %v4201_v36 = vpop.f32.mrf.mxu0  ;;  %v3795_v62 = vadd.f32 %v5751_v49, %v7777_v25 }
 0x1f8   : > { %v3747_v63 = vpop.f32.mrf.mxu1 }
 0x1f9   : > { %v4341_v22 = vadd.f32 %v4340_v29, %v4246_v33  ;;  %v3794_v46 = vadd.f32 %v3747_v63, %v3340_v51  ;;  %v5804_v31 = vpop.f32.mrf.mxu0  ;;  %v4249_v39 = vadd.f32 %v5801_v21, %v3795_v62 }
 0x1fa   : > { %v5754_v44 = vpop.f32.mrf.mxu1 }
 0x1fb   : > { %v4248_v40 = vadd.f32 %v4201_v36, %v3794_v46  ;;  %v4342_v60 = vadd.f32 %v4341_v22, %v4247_v43  ;;  %v3797_v41 = vadd.f32 %v5754_v44, %v7779_v35  ;;  %v4211_v57 = vpop.f32.mrf.mxu0 }
 0x1fc   : > { %v3757_v10 = vpop.f32.mrf.mxu1 }
 0x1fd   : > { %v4343_v5 = vadd.f32 %v4342_v60, %v4248_v40  ;;  %v3796_v16 = vadd.f32 %v3757_v10, %v3342_v52  ;;  %v4251_v23 = vadd.f32 %v5804_v31, %v3797_v41 }
 0x1ff   : > { %v4250_v1 = vadd.f32 %v4211_v57, %v3796_v16  ;;  %v4344_v9 = vadd.f32 %v4343_v5, %v4249_v39 }
 0x201   : > { %v4345_v26 = vadd.f32 %v4344_v9, %v4250_v1 }
 0x203   : > { %v4346_v47 = vadd.f32 %v4345_v26, %v4251_v23 }
 0x205   : > { %v4347_v30 = vrot.slane %v4346_v47, 4 }
 0x207   : > { %v4348_v38 = vadd.f32 %v4347_v30, %v4346_v47 }
 0x209   : > { %v4349_v0 = vrot.slane %v4348_v38, 2 }
 0x20b   : > { %v4350_v19 = vadd.f32 %v4349_v0, %v4348_v38 }
 0x20d   : > { %v4351_v49 = vrot.slane %v4350_v19, 1 }
 0x20f   : > { %v4352_v11 = vadd.f32 %v4351_v49, %v4350_v19 }
 0x211   : > { %v4353_v21 = vmul.f32 0.00390625, %v4352_v11  ;;  %4386 = vst [vmem:[%s7464_s30] sm:$0x1] %v4352_v11 }
 0x213   : > { %v4362_v51 = vsub.f32 %v7370_v6, %v4353_v21  ;;  %v4363_v13 = vsub.f32 %v7373_v7, %v4353_v21  ;;  %v4364_v14 = vsub.f32 %v7380_v58, %v4353_v21  ;;  %v4365_v28 = vsub.f32 %v7383_v15, %v4353_v21 }
 0x214   : > { %v4366_v29 = vsub.f32 %v7390_v4, %v4353_v21  ;;  %v4367_v63 = vsub.f32 %v7393_v54, %v4353_v21  ;;  %v4368_v36 = vsub.f32 %v7400_v48, %v4353_v21  ;;  %v4369_v22 = vsub.f32 %v7403_v45, %v4353_v21 }
 0x215   : > { %v4370_v25 = vsub.f32 %v7410_v8, %v4353_v21  ;;  %v4371_v62 = vsub.f32 %v7413_v24, %v4353_v21  ;;  %v4372_v6 = vsub.f32 %v7420_v37, %v4353_v21  ;;  %v4373_v7 = vsub.f32 %v7423_v42, %v4353_v21 }
 0x216   : > { %v4374_v58 = vsub.f32 %v7430_v3, %v4353_v21  ;;  %v4375_v15 = vsub.f32 %v7433_v34, %v4353_v21  ;;  %v4376_v4 = vsub.f32 %v7440_v50, %v4353_v21  ;;  %v4377_v54 = vsub.f32 %v7443_v12, %v4353_v21 }
 0x217   : > { %v4378_v48 = vsub.f32 %v7450_v27, %v4353_v21  ;;  %v7484_v46 = vsub.f32 %v4245_v32, %v4353_v21  ;;  %v7486_v45 = vsub.f32 %v4246_v33, %v4353_v21  ;;  %v7488_v8 = vsub.f32 %v4247_v43, %v4353_v21 }
 0x218   : > { %v7490_v24 = vsub.f32 %v4248_v40, %v4353_v21  ;;  %v7492_v37 = vsub.f32 %v4249_v39, %v4353_v21  ;;  %v7494_v42 = vsub.f32 %v4250_v1, %v4353_v21  ;;  %v7496_v3 = vsub.f32 %v4251_v23, %v4353_v21 }
 0x219   : > { %v4354_v34 = vsub.f32 %v7331_v55, %v4353_v21  ;;  %v4355_v50 = vsub.f32 %v7333_v20, %v4353_v21  ;;  %v4356_v12 = vsub.f32 %v7341_v53, %v4353_v21  ;;  %v4357_v33 = vsub.f32 %v7343_v59, %v4353_v21 }
 0x21a   : > { %v4358_v43 = vsub.f32 %v7350_v18, %v4353_v21  ;;  %v4359_v56 = vsub.f32 %v7353_v61, %v4353_v21  ;;  %v4360_v60 = vsub.f32 %v7360_v17, %v4353_v21  ;;  %v4361_v20 = vsub.f32 %v7363_v2, %v4353_v21 }
 0x21b   : > { %v4387_v27 = vmul.f32 %v4354_v34, %v4354_v34  ;;  %v4388_v32 = vmul.f32 %v4355_v50, %v4355_v50  ;;  %v4389_v44 = vmul.f32 %v4356_v12, %v4356_v12  ;;  %v4390_v52 = vmul.f32 %v4357_v33, %v4357_v33 }
 0x21c   : > { %v4391_v10 = vmul.f32 %v4358_v43, %v4358_v43  ;;  %v4392_v39 = vmul.f32 %v4359_v56, %v4359_v56  ;;  %v4393_v5 = vmul.f32 %v4360_v60, %v4360_v60  ;;  %v4394_v41 = vmul.f32 %v4361_v20, %v4361_v20 }
 0x21d   : > { %v4419_v31 = vadd.f32 %v4388_v32, %v4387_v27  ;;  %v4395_v16 = vmul.f32 %v4362_v51, %v4362_v51  ;;  %v4396_v57 = vmul.f32 %v4363_v13, %v4363_v13  ;;  %v4397_v9 = vmul.f32 %v4364_v14, %v4364_v14 }
 0x21e   : > { %v4398_v23 = vmul.f32 %v4365_v28, %v4365_v28  ;;  %v4399_v47 = vmul.f32 %v4366_v29, %v4366_v29  ;;  %v4400_v30 = vmul.f32 %v4367_v63, %v4367_v63  ;;  %v4401_v0 = vmul.f32 %v4368_v36, %v4368_v36 }
 0x21f   : > { %v4420_v40 = vadd.f32 %v4419_v31, %v4389_v44  ;;  %v4402_v19 = vmul.f32 %v4369_v22, %v4369_v22  ;;  %v4403_v11 = vmul.f32 %v4370_v25, %v4370_v25  ;;  %v4404_v34 = vmul.f32 %v4371_v62, %v4371_v62 }
 0x220   : > { %v4405_v51 = vmul.f32 %v4372_v6, %v4372_v6  ;;  %v4406_v13 = vmul.f32 %v4373_v7, %v4373_v7  ;;  %v4407_v14 = vmul.f32 %v4374_v58, %v4374_v58  ;;  %v4408_v28 = vmul.f32 %v4375_v15, %v4375_v15 }
 0x221   : > { %v4421_v55 = vadd.f32 %v4420_v40, %v4390_v52  ;;  %v4409_v29 = vmul.f32 %v4376_v4, %v4376_v4  ;;  %v4410_v63 = vmul.f32 %v4377_v54, %v4377_v54  ;;  %v4411_v36 = vmul.f32 %v4378_v48, %v4378_v48 }
 0x222   : > { %v4412_v22 = vmul.f32 %v7484_v46, %v7484_v46  ;;  %v4413_v62 = vmul.f32 %v7486_v45, %v7486_v45  ;;  %v4414_v7 = vmul.f32 %v7488_v8, %v7488_v8  ;;  %v4415_v15 = vmul.f32 %v7490_v24, %v7490_v24 }
 0x223   : > { %v4422_v53 = vadd.f32 %v4421_v55, %v4391_v10  ;;  %v4416_v54 = vmul.f32 %v7492_v37, %v7492_v37  ;;  %v4417_v46 = vmul.f32 %v7494_v42, %v7494_v42  ;;  %v4418_v56 = vmul.f32 %v7496_v3, %v7496_v3 }
 0x225   : > { %v4423_v35 = vadd.f32 %v4422_v53, %v4392_v39 }
 0x227   : > { %v4424_v59 = vadd.f32 %v4423_v35, %v4393_v5 }
 0x229   : > { %v4425_v18 = vadd.f32 %v4424_v59, %v4394_v41 }
 0x22b   : > { %v4426_v1 = vadd.f32 %v4425_v18, %v4395_v16 }
 0x22d   : > { %v4427_v61 = vadd.f32 %v4426_v1, %v4396_v57 }
 0x22f   : > { %v4428_v26 = vadd.f32 %v4427_v61, %v4397_v9 }
 0x231   : > { %v4429_v17 = vadd.f32 %v4428_v26, %v4398_v23 }
 0x233   : > { %v4430_v38 = vadd.f32 %v4429_v17, %v4399_v47 }
 0x235   : > { %v4431_v2 = vadd.f32 %v4430_v38, %v4400_v30 }
 0x237   : > { %v4432_v49 = vadd.f32 %v4431_v2, %v4401_v0 }
 0x239   : > { %v4433_v21 = vadd.f32 %v4432_v49, %v4402_v19 }
 0x23b   : > { %v4434_v50 = vadd.f32 %v4433_v21, %v4403_v11 }
 0x23d   : > { %v4435_v12 = vadd.f32 %v4434_v50, %v4404_v34 }
 0x23f   : > { %v4436_v27 = vadd.f32 %v4435_v12, %v4405_v51 }
 0x241   : > { %v4437_v32 = vadd.f32 %v4436_v27, %v4406_v13 }
 0x243   : > { %v4438_v33 = vadd.f32 %v4437_v32, %v4407_v14 }
 0x245   : > { %v4439_v43 = vadd.f32 %v4438_v33, %v4408_v28 }
 0x247   : > { %v4440_v44 = vadd.f32 %v4439_v43, %v4409_v29 }
 0x249   : > { %v4441_v31 = vadd.f32 %v4440_v44, %v4410_v63 }
 0x24b   : > { %v4442_v25 = vadd.f32 %v4441_v31, %v4411_v36 }
 0x24d   : > { %v4443_v6 = vadd.f32 %v4442_v25, %v4412_v22 }
 0x24f   : > { %v4444_v58 = vadd.f32 %v4443_v6, %v4413_v62 }
 0x251   : > { %v4445_v4 = vadd.f32 %v4444_v58, %v4414_v7 }
 0x253   : > { %v4446_v48 = vadd.f32 %v4445_v4, %v4415_v15 }
 0x255   : > { %v4447_v45 = vadd.f32 %v4446_v48, %v4416_v54 }
 0x257   : > { %v4448_v8 = vadd.f32 %v4447_v45, %v4417_v46 }
 0x259   : > { %v4449_v52 = vadd.f32 %v4448_v8, %v4418_v56 }
 0x25b   : > { %v4450_v40 = vrot.slane %v4449_v52, 4 }
 0x25d   : > { %v4451_v60 = vadd.f32 %v4450_v40, %v4449_v52 }
 0x25f   : > { %v4452_v24 = vrot.slane %v4451_v60, 2 }
 0x261   : > { %v4453_v10 = vadd.f32 %v4452_v24, %v4451_v60 }
 0x263   : > { %v4454_v37 = vrot.slane %v4453_v10, 1 }
 0x265   : > { %v4455_v55 = vadd.f32 %v4454_v37, %v4453_v10 }
 0x267   : > { %4456 = vst [vmem:[%s7464_s30 + $0x1] sm:$0x1] %v4455_v55 }
 0x268   : > { %5876 = shalt.err (!%p5873_p5)
}
 0x269   : > { %s5877_s20 = scalar_lea.hbm %s4470_s7, 32  ;;  %s5881_s25 = scalar_lea.hbm %s7564_s2, 64 }
 0x26a   : > { %p5878_p6 = scmp.ne.s32.totalorder %s4470_s7, %s5877_s20  ;;  %p5882_p10 = scmp.lt.s32.totalorder %s4470_s7, %s7564_s2 }
 0x26b   : > { %p5883_p11 = scmp.lt.s32.totalorder %s5881_s25, %s5877_s20 }
 0x26c   : > { %p5879_p7 = pnand %p5878_p6, %p5997_p4 }
 0x26d   : > { %p5884_p12 = por %p5883_p11, %p5882_p10 }
 0x26e   : > { %p5880_p9 = pneg %p5879_p7 }
 0x270   : > { %p5885_p13 = pnand %p5884_p12, %p5880_p9 }
 0x272   : > { %5888 = shalt.err (!%p5885_p13)
}
 0x273   : > { %5808 = dma.vmem_to_hbm [thread:$0]  (%p5997_p4), %s4473_s4, 32, %s4470_s7, %s4458_s8  }
 0x274 PF: > { %p5814_p0 = scmp.ge.s32.totalorder %s5939_s14, 2  ;;  %s4484_s28 = sand.u32 1, %s5919_s9  }
 0x275   : > { %s4485_s29 = scalar_lea.sflag [#allocation4], %s4484_s28 }
 0x276   : > { %p5811_p1 = pnand %p5814_p0, %p6004_p8 }
 0x278   : > { %p5812_p2 = pneg %p5811_p1 }
 0x27a   : > { %5914 = dma.done.wait (%p5812_p2), %s4485_s29, 32  }
 0x27b   : > { %5916 = vsyncadd (%p5812_p2), %s4485_s29, 4294967264  ;;  %s15_s14 = sadd.s32 1, %s5939_s14   ;;  %s7780_s9 = smov %s5923_s10 }
 0x27c   : > { %p12_p3 = scmp.ge.s32.totalorder %s15_s14, 4   ;;  %s7781_s10 = smov %s5927_s11 }
 0x27d   : > { %s7782_s11 = smov %s6010_s22  ;;  %s7783_s12 = smov %s5935_s13 }
 0x27e   : > { %s7784_s13 = smov %s7786_s17  ;;  %14 = sbr.rel (!%p12_p3) target bundleno = 4 (0x4), region = 74 }
 0x283   :  { %4490 = vsyncpa [#allocation4], 1 }
 0x284   :  { %4492 = vsyncpa [#allocation4 + $0x1], 1 }

</bundles_post_ra>
